<compile_context>
chip_gen: v5e
topology: v5e:2x2
jax: 0.10.0
libtpu: 0.0.40
codegen_flags: <defaults>
</compile_context>

<pallas_src>
import functools

import jax
import jax.numpy as jnp
from jax.experimental import pallas as pl
from jax.experimental.pallas import tpu as pltpu


def _round_up(x, m):
    return -(-x // m) * m


def _fourier_kernel(s_ref, p_ref, o_ref):
    # s_ref: (1, T)           -- batch of s values on the lane axis
    # p_ref: (3, dim, Mp, 1)  -- packed [A, phi, w], resident across the grid
    # o_ref: (dim, T)         -- lane-dense output tile
    s = s_ref[...]                    # (1, T)
    a = p_ref[0]                      # (dim, Mp, 1)
    phi = p_ref[1]                    # (dim, Mp, 1)
    w = p_ref[2]                      # (dim, Mp, 1)
    # Single cos over the full (dim, Mp, T) tile (one EUP push stream),
    # then a sublane reduce over the harmonic axis.
    term = a * jnp.cos(w * s[None, :, :] + phi)        # (dim, Mp, T)
    o_ref[...] = jnp.sum(term, axis=1).astype(o_ref.dtype)   # (dim, T)


@functools.partial(jax.jit, static_argnames=("tile_s",))
def fourier_system_forward(s, A, phi, w, *, tile_s=None):
    """Pallas forward of FourierSystem.forward(s, x).  (`x` is unused by the module.)

    s: scalar or (S,) float32.  A, phi, w: (dim, n_harmonics, 2) float32.
    Returns (S, dim) (or (1, dim) for scalar s), matching the PyTorch module.
    """
    s_vec = jnp.atleast_1d(jnp.asarray(s, jnp.float32))
    S = s_vec.shape[0]
    dim, H, _ = A.shape
    M = 2 * H
    Mp = _round_up(M, 8)              # harmonic axis padded to a sublane multiple

    # Pack params into one resident array: (3, dim, Mp, 1).  Zero-padded A
    # rows contribute exactly 0 regardless of the (also zero) w/phi pads.
    def prep(p):
        p2 = jnp.asarray(p, jnp.float32).reshape(dim, M)       # flatten (h, k)
        p2 = jnp.pad(p2, ((0, 0), (0, Mp - M)))
        return p2.reshape(dim, Mp, 1)

    P = jnp.stack([prep(A), prep(phi), prep(w)], axis=0)        # (3, dim, Mp, 1)

    # Tile selection: big lane-dense tiles, few grid steps.
    if tile_s is None:
        tile_s = min(_round_up(S, 128), 1024)                   # sweepable 512-4096 for huge S
    tile_s = max(128, _round_up(tile_s, 128))
    S_pad = _round_up(S, tile_s)
    n_blocks = S_pad // tile_s
    if n_blocks > 1 and n_blocks % 2 == 1:
        # v7x megacore: even "parallel" block count keeps both TensorCores balanced.
        S_pad += tile_s
        n_blocks += 1

    s2 = jnp.pad(s_vec, (0, S_pad - S)).reshape(1, S_pad)       # padded lanes sliced off below

    out_ds = pl.pallas_call(
        _fourier_kernel,
        out_shape=jax.ShapeDtypeStruct((dim, S_pad), jnp.float32),
        grid_spec=pltpu.PrefetchScalarGridSpec(
            num_scalar_prefetch=0,
            grid=(n_blocks,),
            in_specs=[
                pl.BlockSpec((1, tile_s), lambda i: (0, i)),          # s (lane-major)
                pl.BlockSpec((3, dim, Mp, 1), lambda i: (0, 0, 0, 0)),  # packed params (resident)
            ],
            out_specs=pl.BlockSpec((dim, tile_s), lambda i: (0, i)),
        ),
        compiler_params=pltpu.CompilerParams(
            dimension_semantics=("parallel",)),
    )(s2, P)

    # Module returns (S, dim); if a consumer can take (dim, S) directly,
    # drop this transpose to avoid the extra HBM round-trip for large S.
    return out_ds[:, :S].T


def reference_forward(s, A, phi, w):
    """Pure-JAX reference of FourierSystem.forward (for correctness check)."""
    s = jnp.atleast_1d(jnp.asarray(s, jnp.float32))
    arg = w[None] * s[:, None, None, None] + phi[None]          # (S, dim, H, 2)
    return jnp.sum(A[None] * jnp.cos(arg), axis=(2, 3))          # (S, dim)


# TODO(synk): randomize_parameters() is host-side RNG state mutation on the
# module; parameters are simply regenerated outside the kernel in JAX.

if __name__ == "__main__":
    DIM = 2
    N_HARMONICS = 7          # module draws randint(2, 20); fixed for determinism

    key = jax.random.PRNGKey(0)
    k_a, k_phi, k_w, k_s = jax.random.split(key, 4)
    A = jax.random.uniform(k_a, (DIM, N_HARMONICS, 2), jnp.float32, -10.0, 10.0)
    phi = jax.random.uniform(k_phi, (DIM, N_HARMONICS, 2), jnp.float32, -1.0, 1.0)
    w = jax.random.uniform(k_w, (DIM, N_HARMONICS, 2), jnp.float32, -20.0, 20.0)

    # vector-s branch, S multiple of the lane width: single 256-lane grid step
    S = 256
    s = jax.random.uniform(k_s, (S,), jnp.float32, 0.0, 1.0)
    out = jax.block_until_ready(fourier_system_forward(s, A, phi, w))
    ref = reference_forward(s, A, phi, w)
    assert out.shape == (S, DIM)
    assert jnp.allclose(out, ref, atol=1e-3, rtol=1e-3), "mismatch vs reference (vector s)"

    # vector-s branch, non-multiple S: exercises the wrapper-side padding path
    S2 = 200
    s_odd = jax.random.uniform(k_s, (S2,), jnp.float32, 0.0, 1.0)
    out_odd = jax.block_until_ready(fourier_system_forward(s_odd, A, phi, w))
    ref_odd = reference_forward(s_odd, A, phi, w)
    assert out_odd.shape == (S2, DIM)
    assert jnp.allclose(out_odd, ref_odd, atol=1e-3, rtol=1e-3), "mismatch vs reference (padded s)"

    # multi-block branch: 2500 -> padded to 4096 lanes, 4 parallel 1024-lane blocks
    S3 = 2500
    s_big = jax.random.uniform(k_s, (S3,), jnp.float32, 0.0, 1.0)
    out_big = jax.block_until_ready(fourier_system_forward(s_big, A, phi, w))
    ref_big = reference_forward(s_big, A, phi, w)
    assert out_big.shape == (S3, DIM)
    assert jnp.allclose(out_big, ref_big, atol=1e-3, rtol=1e-3), "mismatch vs reference (multi-block)"

    # scalar-s branch: (1, dim), like the PyTorch module
    out_sc = jax.block_until_ready(fourier_system_forward(s[0], A, phi, w))
    ref_sc = reference_forward(s[0:1], A, phi, w)
    assert out_sc.shape == (1, DIM)
    assert jnp.allclose(out_sc, ref_sc, atol=1e-3, rtol=1e-3), "mismatch vs reference (scalar s)"

    print("KERNEL_OK")
</pallas_src>

<mosaic_0001>
module attributes {stable_mosaic.version = 11 : i64} {
  func.func @_fourier_kernel(%arg0: i32, %arg1: memref<1x256xf32, #tpu.memory_space<vmem>>, %arg2: memref<3x2x16x1xf32, #tpu.memory_space<vmem>>, %arg3: memref<2x256xf32, #tpu.memory_space<vmem>>) attributes {dimension_semantics = [#tpu.dimension_semantics<parallel>], iteration_bounds = array<i64: 1>, scalar_prefetch = 0 : i64, scratch_operands = 0 : i64, tpu.core_type = #tpu.core_type<tc>, window_params = [{transform_indices = @transform_0, window_bounds = array<i64: 1, 256>}, {pipeline_mode = #tpu.pipeline_mode<synchronous>, transform_indices = @transform_1, window_bounds = array<i64: 3, 2, 16, 1>}, {transform_indices = @transform_2, window_bounds = array<i64: 2, 256>}]} {
    %c0 = arith.constant 0 : index
    %c0_0 = arith.constant 0 : index
    %0 = vector.load %arg1[%c0, %c0_0] : memref<1x256xf32, #tpu.memory_space<vmem>>, vector<1x256xf32>
    %c0_1 = arith.constant 0 : index
    %c0_2 = arith.constant 0 : index
    %c0_3 = arith.constant 0 : index
    %c0_4 = arith.constant 0 : index
    %1 = vector.load %arg2[%c0_1, %c0_2, %c0_3, %c0_4] : memref<3x2x16x1xf32, #tpu.memory_space<vmem>>, vector<1x2x16x1xf32>
    %2 = vector.shape_cast %1 : vector<1x2x16x1xf32> to vector<2x16x1xf32>
    %c1 = arith.constant 1 : index
    %c0_5 = arith.constant 0 : index
    %c0_6 = arith.constant 0 : index
    %c0_7 = arith.constant 0 : index
    %3 = vector.load %arg2[%c1, %c0_5, %c0_6, %c0_7] : memref<3x2x16x1xf32, #tpu.memory_space<vmem>>, vector<1x2x16x1xf32>
    %4 = vector.shape_cast %3 : vector<1x2x16x1xf32> to vector<2x16x1xf32>
    %c2 = arith.constant 2 : index
    %c0_8 = arith.constant 0 : index
    %c0_9 = arith.constant 0 : index
    %c0_10 = arith.constant 0 : index
    %5 = vector.load %arg2[%c2, %c0_8, %c0_9, %c0_10] : memref<3x2x16x1xf32, #tpu.memory_space<vmem>>, vector<1x2x16x1xf32>
    %6 = vector.shape_cast %5 : vector<1x2x16x1xf32> to vector<2x16x1xf32>
    %7 = vector.shape_cast %0 : vector<1x256xf32> to vector<1x1x256xf32>
    %8 = vector.broadcast %6 : vector<2x16x1xf32> to vector<2x16x256xf32>
    %9 = vector.broadcast %7 : vector<1x1x256xf32> to vector<2x16x256xf32>
    %10 = arith.mulf %8, %9 : vector<2x16x256xf32>
    %11 = vector.broadcast %4 : vector<2x16x1xf32> to vector<2x16x256xf32>
    %12 = arith.addf %10, %11 : vector<2x16x256xf32>
    %13 = math.cos %12 : vector<2x16x256xf32>
    %14 = vector.broadcast %2 : vector<2x16x1xf32> to vector<2x16x256xf32>
    %15 = arith.mulf %14, %13 : vector<2x16x256xf32>
    %cst = arith.constant dense<0.000000e+00> : vector<2x256xf32>
    %16 = vector.multi_reduction <add>, %15, %cst [1] : vector<2x16x256xf32> to vector<2x256xf32>
    %c0_11 = arith.constant 0 : index
    %c0_12 = arith.constant 0 : index
    %17 = vector.load %arg3[%c0_11, %c0_12] : memref<2x256xf32, #tpu.memory_space<vmem>>, vector<2x256xf32>
    tpu.vector_store %arg3[%c0_11, %c0_12], %16 {strides = array<i32>} : memref<2x256xf32, #tpu.memory_space<vmem>>, vector<2x256xf32>,
    return
  }
  func.func @transform_0(%arg0: i32) -> (i32, i32) {
    %c0_i32 = arith.constant 0 : i32
    %c0_i32_0 = arith.constant 0 : i32
    return %c0_i32, %arg0 : i32, i32
  }
  func.func @transform_1(%arg0: i32) -> (i32, i32, i32, i32) {
    %c0_i32 = arith.constant 0 : i32
    %c0_i32_0 = arith.constant 0 : i32
    %c0_i32_1 = arith.constant 0 : i32
    %c0_i32_2 = arith.constant 0 : i32
    %c0_i32_3 = arith.constant 0 : i32
    return %c0_i32, %c0_i32_0, %c0_i32_1, %c0_i32_2 : i32, i32, i32, i32
  }
  func.func @transform_2(%arg0: i32) -> (i32, i32) {
    %c0_i32 = arith.constant 0 : i32
    %c0_i32_0 = arith.constant 0 : i32
    return %c0_i32, %arg0 : i32, i32
  }
}

</mosaic_0001>

<bundles_post_ra>
// kernel: fourier_system_forward.1
= control target key start
LH: loop header
LB: loop body
LE: loop exit
PB: predicated region body
PF: predicated region fallthrough
CT: control target
= control target key end

     0   :  { %v3023_v2 = vmov 0   ;;  %s3016_s0 = inlined_call_operand.vmem [shape: f32[1,256], index: 0, kind: input, shape index: {}]   ;;  %s3017_s1 = inlined_call_operand.vmem [shape: f32[3,2,16,1], index: 1, kind: input, shape index: {}]   ;;  %s3018_s2 = inlined_call_operand.hbm [shape: f32[2,256], index: 2, kind: output, shape index: {}]  }
   0x1   :  { %v1422_v0 = vld [vmem:[%s3017_s1 + $0x50] sm:$0xff]  ;;  %v1420_v1 = vld [vmem:[%s3017_s1 + $0x40] sm:$0xff]  ;;  %1457 = vset.pattern.permute.xlu1 %v3023_v2  ;;  %1456 = vset.pattern.permute.xlu0 %v3023_v2 }
   0x2   :  { %v1418_v3 = vld [vmem:[%s3017_s1 + $0x30] sm:$0xff]  ;;  %39 = vperm.xlu0 %1456, %v1422_v0   ;;  %29 = vperm.xlu1 %1457, %v1420_v1  }
   0x3   :  { %1458 = vset.pattern.permute.xlu2 %v3023_v2 }
   0x4   :  { %72 = vperm.xlu2 %1458, %v1418_v3  }
   0x5   :  { %7 = vsyncpa [#allocation3], 0  ;;  %v1423_v4 = vld [vmem:[%s3017_s1 + $0x58] sm:$0xff]  ;;  %v1421_v5 = vld [vmem:[%s3017_s1 + $0x48] sm:$0xff]  ;;  %v3027_v3 = vmov 683565275  }
   0x6   :  { %v1419_v6 = vld [vmem:[%s3017_s1 + $0x38] sm:$0xff]  ;;  %v1417_v7 = vld [vmem:[%s3017_s1 + $0x28] sm:$0xff]  ;;  %v1416_v8 = vld [vmem:[%s3017_s1 + $0x20] sm:$0xff]  ;;  %s1407_s9 = sshll.u32 %s3018_s2, 4  ;;  %s1408_s9 = int_to_ptr.hbm [resolvable:$true] %s1407_s9 }
   0x7   :  { %v15_v9 = vld [vmem:[%s3017_s1 + $0x10] sm:$0xff]  ;;  %v16_v10 = vld [vmem:[%s3017_s1 + $0x18] sm:$0xff]  ;;  %v13_v11 = vld [vmem:[%s3017_s1] sm:$0xff] }
   0x8   :  { %v14_v12 = vld [vmem:[%s3017_s1 + $0x8] sm:$0xff]  ;;  %v12_v13 = vld [vmem:[%s3016_s0] sm:$0x3]  ;;  %s1492_s0 = smov [#allocation2]  }
   0x9   :  { %v48_v14 = vperm.slane %v12_v13, 0  ;;  %v49_v17 = vperm.slane %v12_v13, 1  ;;  %s1405_s1 = sshll.u32 %s1492_s0, 4  ;;  %s1406_s1 = int_to_ptr.vmem [resolvable:$true] %s1405_s1 }
   0xa   :  { %44 = vperm.xlu0 %1456, %v1423_v4   ;;  %34 = vperm.xlu1 %1457, %v1421_v5   ;;  %v3051_v5 = vmov 2475754826  }
   0xc   :  { %77 = vperm.xlu2 %1458, %v1419_v6  }
  0x12   :  { %67 = vperm.xlu1 %1457, %v1417_v7   ;;  %62 = vperm.xlu0 %1456, %v1416_v8  }
  0x14   :  { %1332 = vperm.xlu2 %1458, %v15_v9  }
  0x1a   :  { %1337 = vperm.xlu0 %1456, %v16_v10   ;;  %1322 = vperm.xlu1 %1457, %v13_v11   ;;  %v3029_v10 = vmov 2131351028  }
  0x1c   :  { %1327 = vperm.xlu2 %1458, %v14_v12   ;;  %v3055_v12 = vmov 920167782  }
  0x5e   :  { %v73_v18 = vpop.permute.xlu2 %72 }
  0x66   :  { %v78_v39 = vpop.permute.xlu2 %77 }
  0x74   :  { %v40_v15 = vpop.permute.xlu0 %39  ;;  %v30_v21 = vpop.permute.xlu1 %29 }
  0x75   :  { %v56_v16 = vmul.f32 %v48_v14, %v40_v15  ;;  %v57_v20 = vmul.f32 %v49_v17, %v40_v15  ;;  %v1576_v55 = vmul.f32 %v48_v14, %v30_v21  ;;  %v1578_v56 = vmul.f32 %v49_v17, %v30_v21 }
  0x77   :  { %v1550_v19 = vadd.f32 %v73_v18, %v56_v16  ;;  %v1553_v23 = vadd.f32 %v73_v18, %v57_v20  ;;  %v3037_v16 = vmov 2102212464  }
  0x79   :  { %3082 = vst [vmem:[#allocation5_spill] sm:$0xff] %v1550_v19  ;;  %v707_v22 = vand.u32 2139095040, %v1550_v19  ;;  %v861_v25 = vand.u32 2139095040, %v1553_v23  ;;  %v3022_v29 = vand.u32 2147483647, %v1550_v19 }
  0x7a   :  { %3083 = vst [vmem:[#allocation6_spill] sm:$0xff] %v1553_v23  ;;  %v3021_v30 = vand.u32 2147483647, %v1553_v23 }
  0x7b   :  { %v708_v24 = vshrl.u32 %v707_v22, 23  ;;  %v862_v28 = vshrl.u32 %v861_v25, 23  ;;  %v711_v34 = vand.u32 8388607, %v3022_v29  ;;  %v3025_v22 = vmov 1326507024  }
  0x7c   :  { %v35_v27 = vpop.permute.xlu1 %34  ;;  %v45_v32 = vpop.permute.xlu0 %44  ;;  %v865_v35 = vand.u32 8388607, %v3021_v30 }
  0x7d   :  { %v1436_v26 = vadd.s32 4294967169, %v708_v24  ;;  %v1439_v33 = vadd.s32 4294967169, %v862_v28  ;;  %v58_v36 = vmul.f32 %v48_v14, %v45_v32  ;;  %v59_v37 = vmul.f32 %v49_v17, %v45_v32 }
  0x7e   :  { %v712_v40 = vor.u32 8388608, %v711_v34  ;;  %v866_v42 = vor.u32 8388608, %v865_v35  ;;  %v54_v45 = vmul.f32 %v48_v14, %v35_v27  ;;  %v55_v61 = vmul.f32 %v49_v17, %v35_v27 }
  0x7f   :  { %v714_v31 = vadd.s32 1, %v1436_v26  ;;  %v868_v38 = vadd.s32 1, %v1439_v33  ;;  %v1562_v44 = vadd.f32 %v78_v39, %v58_v36  ;;  %v1564_v46 = vadd.f32 %v78_v39, %v59_v37 }
  0x80   :  { %v1568_v49 = vshll.u32 %v712_v40, 8  ;;  %v1570_v50 = vshll.u32 %v866_v42, 8 }
  0x81   :  { %vm715_vm0 = vcmp.gt.s32.totalorder %v714_v31, 0  ;;  %3084 = vst [vmem:[#allocation7_spill] sm:$0xff] %v1564_v46  ;;  %vm869_vm1 = vcmp.gt.s32.totalorder %v868_v38, 0  ;;  %v1015_v51 = vand.u32 2139095040, %v1562_v44  ;;  %v1169_v53 = vand.u32 2139095040, %v1564_v46 }
  0x82   :  { %v716_v41 = vsel %vm715_vm0, %v714_v31, 0  ;;  %3086 = vst [vmem:[#allocation9_spill] sm:$0xff] %v1570_v50  ;;  %v870_v52 = vsel %vm869_vm1, %v868_v38, 0  ;;  %v1582_v58 = vand.u32 65535, %v1568_v49  ;;  %v1585_v59 = vshrl.u32 %v1568_v49, 16 }
  0x83   :  { %v718_v47 = vand.u32 31, %v716_v41  ;;  %v1588_v60 = vand.u32 65535, %v1570_v50  ;;  %v1590_v62 = vshrl.u32 %v716_v41, 5  ;;  %v872_v63 = vand.u32 31, %v870_v52 }
  0x84   :  { %v68_v43 = vpop.permute.xlu1 %67  ;;  %v1593_v0 = vshrl.u32 %v1570_v50, 16  ;;  %v1016_v1 = vshrl.u32 %v1015_v51, 23  ;;  %v1597_v7 = vshrl.u32 %v870_v52, 5  ;;  %v1170_v8 = vshrl.u32 %v1169_v53, 23 }
  0x85   :  { %v1566_v48 = vadd.f32 %v68_v43, %v54_v45  ;;  %v1574_v54 = vsub.s32 32, %v718_v47  ;;  %v721_v4 = vshll.u32 %v3027_v3, %v718_v47  ;;  %v724_v6 = vshll.u32 %v3051_v5, %v718_v47 }
  0x86   :  { %v727_v15 = vshll.u32 %v3029_v10, %v718_v47  ;;  %v730_v18 = vshll.u32 %v3037_v16, %v718_v47  ;;  %v1609_v20 = vadd.f32 %v68_v43, %v55_v61  ;;  %v733_v21 = vshll.u32 %v3055_v12, %v718_v47 }
  0x87   :  { %3085 = vst [vmem:[#allocation8_spill] sm:$0xff] %v1566_v48  ;;  %v399_v57 = vand.u32 2139095040, %v1566_v48  ;;  %v722_v9 = vshrl.u32 %v3051_v5, %v1574_v54  ;;  %v725_v11 = vshrl.u32 %v3029_v10, %v1574_v54  ;;  %v731_v13 = vshrl.u32 %v3055_v12, %v1574_v54 }
  0x88   :  { %v728_v17 = vshrl.u32 %v3037_v16, %v1574_v54  ;;  %3087 = vst [vmem:[#allocation10_spill] sm:$0xff] %v1609_v20  ;;  %v734_v24 = vshrl.u32 %v3025_v22, %v1574_v54  ;;  %v1614_v25 = vsub.s32 32, %v872_v63  ;;  %v1442_v26 = vadd.s32 4294967169, %v1016_v1 }
  0x89   :  { %v400_v14 = vshrl.u32 %v399_v57, 23  ;;  %vm736_vm2 = vcmp.lt.s32.totalorder %v1590_v62, 1  ;;  %vm738_vm3 = vcmp.lt.s32.totalorder %v1590_v62, 3  ;;  %vm739_vm4 = vcmp.lt.s32.totalorder %v1590_v62, 4 }
  0x8a   :  { %v1445_v27 = vadd.s32 4294967169, %v1170_v8  ;;  %v1619_v28 = vor.u32 %v722_v9, %v721_v4  ;;  %v1621_v31 = vor.u32 %v725_v11, %v724_v6  ;;  %v732_v32 = vor.u32 %v731_v13, %v730_v18 }
  0x8b   :  { %v1430_v33 = vadd.s32 4294967169, %v400_v14  ;;  %v1623_v34 = vor.u32 %v728_v17, %v727_v15  ;;  %v875_v35 = vshll.u32 %v3027_v3, %v872_v63  ;;  %v3020_v36 = vand.u32 2147483647, %v1566_v48 }
  0x8c   :  { %v553_v37 = vand.u32 2139095040, %v1609_v20  ;;  %v735_v38 = vor.u32 %v734_v24, %v733_v21  ;;  %v876_v39 = vshrl.u32 %v3051_v5, %v1614_v25  ;;  %v878_v40 = vshll.u32 %v3051_v5, %v872_v63 }
  0x8d   :  { %v1022_v41 = vadd.s32 1, %v1442_v26  ;;  %v879_v42 = vshrl.u32 %v3029_v10, %v1614_v25  ;;  %v885_v43 = vshrl.u32 %v3055_v12, %v1614_v25  ;;  %v1176_v45 = vadd.s32 1, %v1445_v27 }
  0x8e   :  { %v3019_v47 = vand.u32 2147483647, %v1609_v20  ;;  %v744_v51 = vsel %vm736_vm2, %v1619_v28, %v1621_v31  ;;  %v745_v52 = vsel %vm739_vm4, %v732_v32, 920167782  ;;  %v888_v53 = vshrl.u32 %v3025_v22, %v1614_v25 }
  0x8f   :  { %v406_v57 = vadd.s32 1, %v1430_v33  ;;  %v748_v61 = vsel %vm736_vm2, %v1621_v31, %v1623_v34  ;;  %v884_v1 = vshll.u32 %v3037_v16, %v872_v63  ;;  %v403_v4 = vand.u32 8388607, %v3020_v36  ;;  %v63_v33 = vpop.permute.xlu0 %62 }
  0x90   :  { %v554_v6 = vshrl.u32 %v553_v37, 23  ;;  %v881_v8 = vshll.u32 %v3029_v10, %v872_v63  ;;  %v882_v9 = vshrl.u32 %v3037_v16, %v1614_v25  ;;  %v887_v11 = vshll.u32 %v3055_v12, %v872_v63 }
  0x91   :  { %vm1023_vm5 = vcmp.gt.s32.totalorder %v1022_v41, 0  ;;  %v749_v13 = vsel %vm739_vm4, %v735_v38, 1326507024  ;;  %v886_v14 = vor.u32 %v885_v43, %v884_v1  ;;  %vm1177_vm6 = vcmp.gt.s32.totalorder %v1176_v45, 0 }
  0x92   :  { %v557_v15 = vand.u32 8388607, %v3019_v47  ;;  %v746_v17 = vsel %vm738_vm3, %v1623_v34, %v745_v52  ;;  %v1662_v18 = vor.u32 %v876_v39, %v875_v35  ;;  %v889_v21 = vor.u32 %v888_v53, %v887_v11 }
  0x93   :  { %vm407_vm7 = vcmp.gt.s32.totalorder %v406_v57, 0  ;;  %v1664_v24 = vor.u32 %v879_v42, %v878_v40  ;;  %v1024_v63 = vsel %vm1023_vm5, %v1022_v41, 0  ;;  %v404_v26 = vor.u32 8388608, %v403_v4 }
  0x94   :  { %v1433_v27 = vadd.s32 4294967169, %v554_v6  ;;  %v750_v37 = vsel %vm738_vm3, %v732_v32, %v749_v13  ;;  %v1668_v38 = vor.u32 %v882_v9, %v881_v8  ;;  %vm893_vm8 = vcmp.lt.s32.totalorder %v1597_v7, 4 }
  0x95   :  { %v1178_v43 = vsel %vm1177_vm6, %v1176_v45, 0  ;;  %vm890_vm9 = vcmp.lt.s32.totalorder %v1597_v7, 1  ;;  %v899_v35 = vsel %vm893_vm8, %v886_v14, 920167782  ;;  %v408_v39 = vsel %vm407_vm7, %v406_v57, 0 }
  0x96   :  { %v558_v40 = vor.u32 8388608, %v557_v15  ;;  %vm892_vm10 = vcmp.lt.s32.totalorder %v1597_v7, 3  ;;  %v903_v41 = vsel %vm893_vm8, %v889_v21, 1326507024  ;;  %v1677_v42 = vand.u32 31, %v1024_v63 }
  0x97   :  { %v1680_v32 = vadd.f32 %v63_v33, %v1576_v55  ;;  %v1686_v45 = vsel %vm890_vm9, %v1662_v18, %v1664_v24  ;;  %v1688_v52 = vand.u32 31, %v1178_v43  ;;  %v1690_v53 = vshll.u32 %v404_v26, 8 }
  0x98   :  { %v560_v57 = vadd.s32 1, %v1433_v27  ;;  %v1695_v1 = vsel %vm892_vm10, %v1668_v38, %v899_v35  ;;  %v1701_v55 = vsel %vm890_vm9, %v1664_v24, %v1668_v38  ;;  %v410_v4 = vand.u32 31, %v408_v39 }
  0x99   :  { %3088 = vst [vmem:[#allocation11_spill] sm:$0xff] %v1680_v32  ;;  %vm737_vm11 = vcmp.lt.s32.totalorder %v1590_v62, 2  ;;  %v1706_v6 = vsel %vm892_vm10, %v886_v14, %v903_v41  ;;  %v1708_v8 = vshrl.u32 %v1024_v63, 5  ;;  %v1710_v9 = vshll.u32 %v558_v40, 8 }
  0x9a   :  { %3089 = vst [vmem:[#allocation12_spill] sm:$0xff] %v1688_v52  ;;  %v747_v11 = vsel %vm737_vm11, %v744_v51, %v746_v17  ;;  %v1715_v13 = vsub.s32 32, %v1677_v42  ;;  %v1718_v15 = vadd.f32 %v63_v33, %v1578_v56  ;;  %v91_v21 = vand.u32 2139095040, %v1680_v32 }
  0x9b   :  { %3090 = vst [vmem:[#allocation13_spill] sm:$0xff] %v1690_v53  ;;  %v751_v26 = vsel %vm737_vm11, %v748_v61, %v750_v37  ;;  %v1723_v14 = vshrl.u32 %v1178_v43, 5  ;;  %v1726_v63 = vsub.s32 32, %v1688_v52  ;;  %v1729_v27 = vand.u32 65535, %v1690_v53 }
  0x9c   :  { %3091 = vst [vmem:[#allocation14_spill] sm:$0xff] %v1710_v9  ;;  %vm561_vm12 = vcmp.gt.s32.totalorder %v560_v57, 0  ;;  %v411_v51 = vsub.s32 32, %v410_v4  ;;  %v755_v17 = vand.u32 65535, %v751_v26  ;;  %v756_v35 = vshrl.u32 %v751_v26, 16 }
  0x9d   :  { %3092 = vst [vmem:[#allocation15_spill] sm:$0xff] %v1718_v15  ;;  %v778_v40 = vshrl.u32 %v747_v11, 16  ;;  %v1732_v56 = vshrl.u32 %v1690_v53, 16  ;;  %v1735_v33 = vand.u32 65535, %v1710_v9  ;;  %v1738_v61 = vshrl.u32 %v1710_v9, 16 }
  0x9e   :  { %3093 = vst [vmem:[#allocation16_spill] sm:$0xff] %v1723_v14  ;;  %v777_v37 = vand.u32 65535, %v747_v11  ;;  %v1740_v43 = vshrl.u32 %v408_v39, 5  ;;  %v1742_v41 = vsel %vm561_vm12, %v560_v57, 0  ;;  %v92_v47 = vshrl.u32 %v91_v21, 23 }
  0x9f   :  { %3094 = vst [vmem:[#allocation17_spill] sm:$0xff] %v1726_v63  ;;  %v413_v26 = vshll.u32 %v3027_v3, %v410_v4  ;;  %v416_v30 = vshll.u32 %v3051_v5, %v410_v4  ;;  %v419_v29 = vshll.u32 %v3029_v10, %v410_v4  ;;  %v1749_v2 = vmul.u32 %v756_v35, %v1582_v58 }
  0xa0   :  { %3095 = vst [vmem:[#allocation18_spill] sm:$0xff] %v1735_v33  ;;  %v420_v22 = vshrl.u32 %v3037_v16, %v411_v51  ;;  %v422_v11 = vshll.u32 %v3037_v16, %v410_v4  ;;  %v1754_v39 = vmul.u32 %v755_v17, %v1585_v59  ;;  %v780_v57 = vmul.u32 %v778_v40, %v1582_v58 }
  0xa1   :  { %3096 = vst [vmem:[#allocation19_spill] sm:$0xff] %v1738_v61  ;;  %v425_v21 = vshll.u32 %v3055_v12, %v410_v4  ;;  %v757_v36 = vmul.u32 %v755_v17, %v1582_v58  ;;  %v761_v3 = vshll.u32 %v1749_v2, 16  ;;  %v1761_v10 = vmul.u32 %v777_v37, %v1585_v59 }
  0xa2   :  { %v414_v20 = vshrl.u32 %v3051_v5, %v411_v51  ;;  %v3097_v48 = vmov 2131351028   ;;  %v779_v16 = vmul.u32 %v777_v37, %v1582_v58  ;;  %v783_v19 = vshll.u32 %v780_v57, 16 }
  0xa3   :  { %v417_v23 = vshrl.u32 %v3097_v48, %v411_v51  ;;  %v423_v32 = vshrl.u32 %v3055_v12, %v411_v51  ;;  %v3098_v14 = vmov 1326507024   ;;  %vm765_vm13 = vc.u32 %v757_v36, %v761_v3 }
  0xa4   :  { %v426_v52 = vshrl.u32 %v3098_v14, %v411_v51  ;;  %v767_v4 = vadd.s32 %v761_v3, %v757_v36  ;;  %v421_v63 = vor.u32 %v420_v22, %v419_v29  ;;  %v763_v17 = vshll.u32 %v1754_v39, 16 }
  0xa5   :  { %v782_v46 = vmul.u32 %v778_v40, %v1585_v59  ;;  %vm787_vm14 = vc.u32 %v779_v16, %v783_v19  ;;  %v3099_v61 = vmov 0   ;;  %v785_v5 = vshll.u32 %v1761_v10, 16 }
  0xa6   :  { %v766_v33 = vsel %vm765_vm13, 1, %v3099_v61  ;;  %v788_v15 = vsel %vm787_vm14, 1, %v3099_v61  ;;  %v1773_v58 = vadd.s32 %v783_v19, %v779_v16  ;;  %v3100_v37 = vmov 683565275  }
  0xa7   :  { %v412_v12 = vshrl.u32 %v3100_v37, %v411_v51  ;;  %vm431_vm15 = vcmp.lt.s32.totalorder %v1740_v43, 4  ;;  %v760_v3 = vmul.u32 %v756_v35, %v1585_v59  ;;  %vm769_vm0 = vc.u32 %v767_v4, %v763_v17 }
  0xa8   :  { %v415_v29 = vor.u32 %v414_v20, %v413_v26  ;;  %v418_v22 = vor.u32 %v417_v23, %v416_v30  ;;  %v790_v36 = vadd.s32 %v788_v15, %v782_v46  ;;  %vm791_vm1 = vc.u32 %v1773_v58, %v785_v5 }
  0xa9   :  { %v424_v40 = vor.u32 %v423_v32, %v422_v11  ;;  %v768_v9 = vadd.s32 %v766_v33, %v760_v3  ;;  %v792_v50 = vsel %vm791_vm1, 1, %v3099_v61  ;;  %vm891_vm5 = vcmp.lt.s32.totalorder %v1597_v7, 2 }
  0xaa   :  { %v427_v19 = vor.u32 %v426_v52, %v425_v21  ;;  %v433_v16 = vsel %vm431_vm15, %v421_v63, 2102212464  ;;  %v770_v59 = vsel %vm769_vm0, 1, %v3099_v61  ;;  %v1790_v23 = vsel %vm891_vm5, %v1686_v45, %v1695_v1 }
  0xab   :  { %vm428_vm6 = vcmp.lt.s32.totalorder %v1740_v43, 1  ;;  %v1424_v30 = vadd.s32 4294967169, %v92_v47  ;;  %v1797_v46 = vsel %vm891_vm5, %v1701_v55, %v1706_v6  ;;  %v932_v20 = vshrl.u32 %v1790_v23, 16 }
  0xac   :  { %vm430_vm7 = vcmp.lt.s32.totalorder %v1740_v43, 3  ;;  %v432_v32 = vsel %vm428_vm6, %v412_v12, %v415_v29  ;;  %v720_v45 = vshrl.u32 %v3100_v37, %v1574_v54  ;;  %v794_v52 = vadd.s32 %v792_v50, %v790_v36 }
  0xad   :  { %v434_v47 = vsel %vm430_vm7, %v418_v22, %v433_v16  ;;  %v437_v1 = vsel %vm431_vm15, %v424_v40, 920167782  ;;  %v772_v15 = vadd.s32 %v770_v59, %v768_v9  ;;  %v910_v55 = vshrl.u32 %v1797_v46, 16 }
  0xae   :  { %vm429_vm12 = vcmp.lt.s32.totalorder %v1740_v43, 2  ;;  %v441_v6 = vsel %vm431_vm15, %v427_v19, 1326507024  ;;  %v1814_v12 = vand.u32 31, %v1742_v41  ;;  %v784_v51 = vshrl.u32 %v780_v57, 16 }
  0xaf   :  { %v436_v50 = vsel %vm428_vm6, %v415_v29, %v418_v22  ;;  %v1819_v54 = vshrl.u32 %v1742_v41, 5  ;;  %v762_v35 = vshrl.u32 %v1749_v2, 16  ;;  %v1825_v9 = vmul.u32 %v932_v20, %v1588_v60 }
  0xb0   :  { %v1829_v33 = vsel %vm429_vm12, %v432_v32, %v434_v47  ;;  %v438_v26 = vsel %vm430_vm7, %v421_v63, %v437_v1  ;;  %v440_v11 = vsel %vm428_vm6, %v418_v22, %v421_v63  ;;  %v795_v57 = vadd.s32 %v794_v52, %v784_v51 }
  0xb1   :  { %3101 = vst [vmem:[#allocation20_spill] sm:$0xff] %v1829_v33  ;;  %v442_v41 = vsel %vm430_vm7, %v424_v40, %v441_v6  ;;  %v773_v2 = vadd.s32 %v772_v15, %v762_v35  ;;  %v1838_v21 = vmul.u32 %v910_v55, %v1588_v60  ;;  %v931_v4 = vand.u32 65535, %v1790_v23 }
  0xb2   :  { %v565_v17 = vsub.s32 32, %v1814_v12  ;;  %v567_v3 = vshll.u32 %v3100_v37, %v1814_v12  ;;  %v1844_v29 = vadd.s32 1, %v1424_v30  ;;  %v786_v36 = vshrl.u32 %v1761_v10, 16 }
  0xb3   :  { %v741_v63 = vsel %vm739_vm4, %v1623_v34, 2102212464  ;;  %v764_v22 = vshrl.u32 %v1754_v39, 16  ;;  %v909_v40 = vand.u32 65535, %v1797_v46  ;;  %v937_v19 = vshll.u32 %v1825_v9, 16 }
  0xb4   :  { %v1855_v16 = vsel %vm429_vm12, %v436_v50, %v438_v26  ;;  %v443_v59 = vsel %vm429_vm12, %v440_v11, %v442_v41  ;;  %v796_v32 = vadd.s32 %v795_v57, %v786_v36  ;;  %v915_v34 = vshll.u32 %v1838_v21, 16 }
  0xb5   :  { %v1861_v52 = vadd.s32 %v773_v2, %v764_v22  ;;  %v933_v39 = vmul.u32 %v931_v4, %v1588_v60  ;;  %v1866_v46 = vmul.u32 %v931_v4, %v1593_v0  ;;  %v1869_v47 = vshrl.u32 %v3100_v37, %v565_v17 }
  0xb6   :  { %v740_v43 = vsel %vm736_vm2, %v720_v45, %v1619_v28  ;;  %v742_v1 = vsel %vm738_vm3, %v1621_v31, %v741_v63  ;;  %v1880_v15 = vadd.s32 %v1773_v58, %v785_v5  ;;  %v911_v6 = vmul.u32 %v909_v40, %v1588_v60 }
  0xb7   :  { %v1884_v51 = vmul.u32 %v909_v40, %v1593_v0  ;;  %vm941_vm4 = vc.u32 %v933_v39, %v937_v19  ;;  %v1886_v50 = vadd.s32 %v937_v19, %v933_v39  ;;  %v447_v35 = vand.u32 65535, %v443_v59 }
  0xb8   :  { %v448_v26 = vshrl.u32 %v443_v59, 16  ;;  %v469_v28 = vand.u32 65535, %v1855_v16  ;;  %v800_v45 = vadd.s32 1, %v796_v32  ;;  %vm799_vm2 = vc.u32 %v1861_v52, %v1880_v15 }
  0xb9   :  { %vm919_vm3 = vc.u32 %v911_v6, %v915_v34  ;;  %v921_v10 = vadd.s32 %v915_v34, %v911_v6  ;;  %v939_v5 = vshll.u32 %v1866_v46, 16  ;;  %v3060_v60 = vshrl.u32 %v1855_v16, 16 }
  0xba   :  { %v3102_v31 = vmov 2475754826   ;;  %v743_v11 = vsel %vm737_vm11, %v740_v43, %v742_v1  ;;  %v942_v57 = vsel %vm941_vm4, 1, %v3099_v61  ;;  %v917_v2 = vshll.u32 %v1884_v51, 16 }
  0xbb   :  { %v568_v58 = vshrl.u32 %v3102_v31, %v565_v17  ;;  %v570_v41 = vshll.u32 %v3102_v31, %v1814_v12  ;;  %v936_v4 = vmul.u32 %v932_v20, %v1593_v0  ;;  %vm945_vm13 = vc.u32 %v1886_v50, %v939_v5 }
  0xbc   :  { %v1907_v36 = vmul.u32 %v448_v26, %v1729_v27  ;;  %v571_v62 = vshrl.u32 %v3097_v48, %v565_v17  ;;  %v801_v63 = vsel %vm799_vm2, %v800_v45, %v796_v32  ;;  %v920_v22 = vsel %vm919_vm3, 1, %v3099_v61 }
  0xbd   :  { %v797_v40 = vmul.u32 %v1568_v49, %v743_v11  ;;  %v914_v19 = vmul.u32 %v910_v55, %v1593_v0  ;;  %vm923_vm11 = vc.u32 %v921_v10, %v917_v2  ;;  %v944_v59 = vadd.s32 %v942_v57, %v936_v4 }
  0xbe   :  { %3103 = vst [vmem:[#allocation21_spill] sm:$0xff] %v1907_v36  ;;  %v1914_v23 = vmul.u32 %v447_v35, %v1729_v27  ;;  %v573_v20 = vshll.u32 %v3097_v48, %v1814_v12  ;;  %v3104_v34 = vmov 2102212464   ;;  %v946_v43 = vsel %vm945_vm13, 1, %v3099_v61 }
  0xbf   :  { %v574_v39 = vshrl.u32 %v3104_v34, %v565_v17  ;;  %v1921_v32 = vmul.u32 %v447_v35, %v1732_v56  ;;  %v1924_v1 = vmul.u32 %v448_v26, %v1732_v56  ;;  %v1926_v49 = vadd.s32 %v801_v63, %v797_v40 }
  0xc0   :  { %v922_v0 = vadd.s32 %v920_v22, %v914_v19  ;;  %v1931_v55 = vmul.u32 %v469_v28, %v1729_v27  ;;  %v3106_v6 = vmov 920167782   ;;  %v580_v10 = vshrl.u32 %v3098_v14, %v565_v17 }
  0xc1   :  { %v577_v45 = vshrl.u32 %v3106_v6, %v565_v17  ;;  %v924_v11 = vsel %vm923_vm11, 1, %v3099_v61  ;;  %v453_v35 = vshll.u32 %v1907_v36, 16  ;;  %v1940_v26 = vmul.u32 %v3060_v60, %v1729_v27 }
  0xc2   :  { %3105 = vst [vmem:[#allocation22_spill] sm:$0xff] %v1931_v55  ;;  %v1942_v57 = vor.u32 %v568_v58, %v567_v3  ;;  %v948_v2 = vadd.s32 %v946_v43, %v944_v59  ;;  %v1944_v4 = vor.u32 %v571_v62, %v570_v41  ;;  %v1946_v63 = vor.u32 %v574_v39, %v573_v20 }
  0xc3   :  { %3107 = vst [vmem:[#allocation23_spill] sm:$0xff] %v1940_v26  ;;  %v576_v22 = vshll.u32 %v3104_v34, %v1814_v12  ;;  %v579_v17 = vshll.u32 %v3106_v6, %v1814_v12  ;;  %v803_v40 = vadd.s32 536870912, %v1926_v49  ;;  %v926_v19 = vadd.s32 %v924_v11, %v922_v0 }
  0xc4   :  { %v938_v30 = vshrl.u32 %v1825_v9, 16  ;;  %v1039_v27 = vshrl.u32 %v3106_v6, %v1715_v13  ;;  %vm585_vm14 = vcmp.lt.s32.totalorder %v1819_v54, 4  ;;  %v1042_v41 = vshrl.u32 %v3098_v14, %v1715_v13 }
  0xc5   :  { %v578_v3 = vor.u32 %v577_v45, %v576_v22  ;;  %v581_v58 = vor.u32 %v580_v10, %v579_v17  ;;  %v916_v62 = vshrl.u32 %v1838_v21, 16  ;;  %v3061_v12 = vand.u32 2147483647, %v1562_v44 }
  0xc6   :  { %v949_v59 = vadd.s32 %v948_v2, %v938_v30  ;;  %v1038_v20 = vshll.u32 %v3104_v34, %v1677_v42  ;;  %v1030_v9 = vshrl.u32 %v3102_v31, %v1715_v13  ;;  %v1033_v39 = vshrl.u32 %v3097_v48, %v1715_v13 }
  0xc7   :  { %v1036_v43 = vshrl.u32 %v3104_v34, %v1715_v13  ;;  %v1041_v0 = vshll.u32 %v3106_v6, %v1677_v42  ;;  %vm582_vm15 = vcmp.lt.s32.totalorder %v1819_v54, 1  ;;  %v1972_v21 = vshrl.u32 %v803_v40, 30 }
  0xc8   :  { %v927_v30 = vadd.s32 %v926_v19, %v916_v62  ;;  %v940_v45 = vshrl.u32 %v1866_v46, 16  ;;  %v1040_v10 = vor.u32 %v1039_v27, %v1038_v20  ;;  %vm584_vm0 = vcmp.lt.s32.totalorder %v1819_v54, 3 }
  0xc9   :  { %v1029_v11 = vshll.u32 %v3100_v37, %v1677_v42  ;;  %v1032_v2 = vshll.u32 %v3102_v31, %v1677_v42  ;;  %v1035_v22 = vshll.u32 %v3097_v48, %v1677_v42  ;;  %v1043_v17 = vor.u32 %v1042_v41, %v1041_v0 }
  0xca   :  { %v895_v40 = vsel %vm893_vm8, %v1668_v38, 2102212464  ;;  %v918_v19 = vshrl.u32 %v1884_v51, 16  ;;  %v950_v62 = vadd.s32 %v949_v59, %v940_v45  ;;  %v1019_v27 = vand.u32 8388607, %v3061_v12 }
  0xcb   :  { %vm1991_vm1 = vc.u32 %v1914_v23, %v453_v35  ;;  %v1995_v60 = vor.u32 %v1030_v9, %v1029_v11  ;;  %v1997_v42 = vor.u32 %v1033_v39, %v1032_v2  ;;  %v1999_v41 = vor.u32 %v1036_v43, %v1035_v22 }
  0xcc   :  { %vm1047_vm8 = vcmp.lt.s32.totalorder %v1708_v8, 4  ;;  %v805_v38 = vshll.u32 %v1972_v21, 30  ;;  %v874_v51 = vshrl.u32 %v3100_v37, %v1614_v25  ;;  %v2005_v59 = vadd.s32 %v927_v30, %v918_v19 }
  0xcd   :  { %v1053_v0 = vsel %vm1047_vm8, %v1040_v10, 920167782  ;;  %v591_v9 = vsel %vm585_vm14, %v578_v3, 920167782  ;;  %v595_v39 = vsel %vm585_vm14, %v581_v58, 1326507024  ;;  %v896_v43 = vsel %vm892_vm10, %v1664_v24, %v895_v40 }
  0xce   :  { %v1057_v45 = vsel %vm1047_vm8, %v1043_v17, 1326507024  ;;  %v894_v25 = vsel %vm890_vm9, %v874_v51, %v1662_v18  ;;  %v2024_v30 = vadd.s32 %v1886_v50, %v939_v5  ;;  %vm1044_vm6 = vcmp.lt.s32.totalorder %v1708_v8, 1 }
  0xcf   :  { %vm1046_vm7 = vcmp.lt.s32.totalorder %v1708_v8, 3  ;;  %v954_v58 = vadd.s32 1, %v950_v62  ;;  %v1020_v11 = vor.u32 8388608, %v1019_v27  ;;  %v1052_v24 = vsel %vm1044_vm6, %v1995_v60, %v1997_v42 }
  0xd0   :  { %v1054_v18 = vsel %vm1046_vm7, %v1999_v41, %v1053_v0  ;;  %v2036_v46 = vsub.s32 %v1926_v49, %v805_v38  ;;  %vm953_vm9 = vc.u32 %v2005_v59, %v2024_v30  ;;  %v1056_v50 = vsel %vm1044_vm6, %v1997_v42, %v1999_v41  ;;  %v3110_v0 = vld [vmem:[#allocation9_spill] sm:$0xff] }
  0xd1   :  { %v1058_v5 = vsel %vm1046_vm7, %v1040_v10, %v1057_v45  ;;  %v587_v2 = vsel %vm585_vm14, %v1946_v63, 2102212464  ;;  %v590_v49 = vsel %vm582_vm15, %v1942_v57, %v1944_v4  ;;  %v897_v22 = vsel %vm891_vm5, %v894_v25, %v896_v43 }
  0xd2   :  { %vm1045_vm10 = vcmp.lt.s32.totalorder %v1708_v8, 2  ;;  %v592_v17 = vsel %vm584_vm0, %v1946_v63, %v591_v9  ;;  %v594_v10 = vsel %vm582_vm15, %v1944_v4, %v1946_v63  ;;  %v596_v40 = vsel %vm584_vm0, %v578_v3, %v595_v39 }
  0xd3   :  { %v2067_v19 = vsel %vm1045_vm10, %v1052_v24, %v1054_v18  ;;  %vm583_vm5 = vcmp.lt.s32.totalorder %v1819_v54, 2  ;;  %v955_v7 = vsel %vm953_vm9, %v954_v58, %v950_v62  ;;  %v2072_v27 = vsel %vm1045_vm10, %v1056_v50, %v1058_v5 }
  0xd4   :  { %v2074_v38 = vshll.u32 %v1020_v11, 8  ;;  %v586_v63 = vsel %vm582_vm15, %v1869_v47, %v1942_v57  ;;  %v588_v3 = vsel %vm584_vm0, %v1944_v4, %v587_v2  ;;  %v808_v51 = vsub.s32 0, %v2036_v46 }
  0xd5   :  { %v951_v9 = vmul.u32 %v3110_v0, %v897_v22  ;;  %v593_v62 = vsel %vm583_vm5, %v590_v49, %v592_v17  ;;  %v597_v39 = vsel %vm583_vm5, %v594_v10, %v596_v40  ;;  %vm807_vm12 = vcmp.lt.s32.totalorder %v2036_v46, 0 }
  0xd6   :  { %v3063_v43 = vshrl.u32 %v2067_v19, 16  ;;  %v458_v47 = vsel %vm1991_vm1, 1, %v3099_v61  ;;  %v2097_v57 = vmul.u32 %v469_v28, %v1732_v56  ;;  %v3062_v45 = vshrl.u32 %v2072_v27, 16 }
  0xd7   :  { %v2099_v4 = vadd.s32 %v955_v7, %v951_v9  ;;  %v3112_v25 = vshrl.u32 %v1855_v16, 16  ;;  %v2109_v11 = vsel %vm583_vm5, %v586_v63, %v588_v3  ;;  %vm99_vm4 = vcmp.gt.s32.totalorder %v1844_v29, 0  ;;  %v3120_v3 = vld [vmem:[#allocation18_spill] sm:$0xff] }
  0xd8   :  { %3111 = vst [vmem:[#allocation9_spill] sm:$0xff] %v2097_v57  ;;  %v1061_v20 = vand.u32 65535, %v2074_v38  ;;  %v602_v24 = vshrl.u32 %v597_v39, 16  ;;  %v623_v28 = vand.u32 65535, %v593_v62  ;;  %v624_v18 = vshrl.u32 %v593_v62, 16 }
  0xd9   :  { %v2105_v58 = vmul.u32 %v3112_v25, %v1732_v56  ;;  %3114 = vst [vmem:[#allocation25_spill] sm:$0xff] %v2109_v11  ;;  %v809_v50 = vsel %vm807_vm12, %v808_v51, %v2036_v46  ;;  %v2118_v56 = vadd.s32 %v453_v35, %v1914_v23  ;;  %v2121_v54 = vadd.s32 %v458_v47, %v1924_v1  ;;  %v3118_v35 = vld [vmem:[#allocation15_spill] sm:$0xff] }
  0xda   :  { %v2125_v16 = vmul.u32 %v3063_v43, %v1061_v20  ;;  %v601_v2 = vand.u32 65535, %v597_v39  ;;  %v957_v17 = vadd.s32 536870912, %v2099_v4  ;;  %v2132_v10 = vmul.u32 %v3062_v45, %v1061_v20  ;;  %v3124_v39 = vld [vmem:[#allocation19_spill] sm:$0xff] }
  0xdb   :  { %3113 = vst [vmem:[#allocation24_spill] sm:$0xff] %v2105_v58  ;;  %v100_v23 = vsel %vm99_vm4, %v1844_v29, 0  ;;  %v3119_v40 = vand.u32 2139095040, %v3118_v35  ;;  %v810_v7 = vclz %v809_v50  ;;  %v1085_v63 = vand.u32 65535, %v2067_v19 }
  0xdc   :  { %3115 = vst [vmem:[#allocation26_spill] sm:$0xff] %v2118_v56  ;;  %v2139_v51 = vmul.u32 %v602_v24, %v3120_v3  ;;  %v2142_v0 = vmul.u32 %v623_v28, %v3120_v3  ;;  %v2145_v9 = vmul.u32 %v624_v18, %v3120_v3  ;;  %v1063_v62 = vand.u32 65535, %v2072_v27 }
  0xdd   :  { %3116 = vst [vmem:[#allocation27_spill] sm:$0xff] %v2121_v54  ;;  %v246_v1 = vshrl.u32 %v3119_v40, 23  ;;  %v2149_v47 = vmul.u32 %v623_v28, %v3124_v39  ;;  %v2152_v29 = vmul.u32 %v624_v18, %v3124_v39  ;;  %v1062_v25 = vshrl.u32 %v2074_v38, 16 }
  0xde   :  { %3121 = vst [vmem:[#allocation15_spill] sm:$0xff] %v2139_v51  ;;  %v1091_v50 = vshll.u32 %v2125_v16, 16  ;;  %v603_v40 = vmul.u32 %v601_v2, %v3120_v3  ;;  %v2158_v22 = vmul.u32 %v601_v2, %v3124_v39  ;;  %v2160_v12 = vshrl.u32 %v957_v17, 30 }
  0xdf   :  { %3122 = vst [vmem:[#allocation18_spill] sm:$0xff] %v2142_v0  ;;  %v1069_v5 = vshll.u32 %v2132_v10, 16  ;;  %v2163_v45 = vand.u32 31, %v100_v23  ;;  %v1437_v28 = vadd.s32 4294967294, %v810_v7  ;;  %v1087_v43 = vmul.u32 %v1085_v63, %v1061_v20 }
  0xe0   :  { %3123 = vst [vmem:[#allocation28_spill] sm:$0xff] %v2145_v9  ;;  %v2165_v11 = vmul.u32 %v1085_v63, %v1062_v25  ;;  %v2168_v18 = vmul.u32 %v602_v24, %v3124_v39  ;;  %v607_v49 = vshll.u32 %v2139_v51, 16  ;;  %v2171_v3 = vmul.u32 %v1063_v62, %v1062_v25 }
  0xe1   :  { %3125 = vst [vmem:[#allocation19_spill] sm:$0xff] %v2149_v47  ;;  %v2173_v2 = vshrl.u32 %v100_v23, 5  ;;  %v1427_v17 = vadd.s32 4294967169, %v246_v1  ;;  %vm1095_vm2 = vc.u32 %v1087_v43, %v1091_v50  ;;  %v2175_v0 = vadd.s32 %v1091_v50, %v1087_v43 }
  0xe2   :  { %3126 = vst [vmem:[#allocation29_spill] sm:$0xff] %v2152_v29  ;;  %v1065_v29 = vmul.u32 %v1063_v62, %v1061_v20  ;;  %v959_v7 = vshll.u32 %v2160_v12, 30  ;;  %v2180_v24 = vsub.s32 32, %v2163_v45  ;;  %v2184_v20 = vshll.u32 %v3104_v34, %v2163_v45 }
  0xe3   :  { %3127 = vst [vmem:[#allocation30_spill] sm:$0xff] %v2158_v22  ;;  %vm1438_vm13 = vcmp.lt.s32.totalorder %v1437_v28, 0  ;;  %v3071_v23 = vshll.u32 %v2165_v11, 16  ;;  %vm611_vm11 = vc.u32 %v603_v40, %v607_v49  ;;  %v2189_v43 = vshll.u32 %v3106_v6, %v2163_v45 }
  0xe4   :  { %vm1073_vm3 = vc.u32 %v1065_v29, %v1069_v5  ;;  %v1075_v63 = vadd.s32 %v1069_v5, %v1065_v29  ;;  %v1071_v1 = vshll.u32 %v2171_v3, 16  ;;  %v1096_v62 = vsel %vm1095_vm2, 1, %v3099_v61 }
  0xe5   :  { %v2193_v5 = vadd.s32 %v607_v49, %v603_v40  ;;  %v1074_v39 = vsel %vm1073_vm3, 1, %v3099_v61  ;;  %v3129_v29 = vshrl.u32 %v2067_v19, 16  ;;  %vm1099_vm14 = vc.u32 %v2175_v0, %v3071_v23 }
  0xe6   :  { %v2201_v47 = vsel %vm1438_vm13, 0, %v1437_v28  ;;  %v2204_v51 = vsub.s32 %v2099_v4, %v959_v7  ;;  %v3130_v9 = vshrl.u32 %v2072_v27, 16  ;;  %vm1077_vm15 = vc.u32 %v1075_v63, %v1071_v1  ;;  %v3132_v7 = vld [vmem:[#allocation17_spill] sm:$0xff]  ;;  %v3133_v63 = vld [vmem:[#allocation12_spill] sm:$0xff] }
  0xe7   :  { %3128 = vst [vmem:[#allocation31_spill] sm:$0xff] %v2193_v5  ;;  %v1090_v50 = vmul.u32 %v3129_v29, %v1062_v25  ;;  %v2209_v49 = vsel %vm611_vm11, 1, %v3099_v61  ;;  %v2211_v40 = vadd.s32 1, %v1427_v17  ;;  %v3131_v29 = vld [vmem:[#allocation7_spill] sm:$0xff]  ;;  %v2216_v23 = vshrl.u32 %v3106_v6, %v2180_v24 }
  0xe8   :  { %v1068_v33 = vmul.u32 %v3130_v9, %v1062_v25  ;;  %v3076_v53 = vand.u32 2147483647, %v3131_v29  ;;  %v1100_v4 = vsel %vm1099_vm14, 1, %v3099_v61  ;;  %v1193_v27 = vshrl.u32 %v3106_v6, %v3132_v7 }
  0xe9   :  { %v1098_v19 = vadd.s32 %v1096_v62, %v1090_v50  ;;  %v798_v9 = vadd.s32 %v1880_v15, %v1861_v52  ;;  %v818_v25 = vsub.s32 4294967266, %v2201_v47  ;;  %v1078_v17 = vsel %vm1077_vm15, 1, %v3099_v61 }
  0xea   :  { %v1076_v28 = vadd.s32 %v1074_v39, %v1068_v33  ;;  %v1192_v1 = vshll.u32 %v3104_v34, %v3133_v63  ;;  %vm961_vm0 = vcmp.lt.s32.totalorder %v2204_v51, 0  ;;  %v1184_v33 = vshrl.u32 %v3102_v31, %v3132_v7 }
  0xeb   :  { %v1187_v62 = vshrl.u32 %v3097_v48, %v3132_v7  ;;  %v1190_v39 = vshrl.u32 %v3104_v34, %v3132_v7  ;;  %v1102_v50 = vadd.s32 %v1100_v4, %v1098_v19  ;;  %v1173_v52 = vand.u32 8388607, %v3076_v53  ;;  %v3134_v53 = vld [vmem:[#allocation16_spill] sm:$0xff] }
  0xec   :  { %v1194_v15 = vor.u32 %v1193_v27, %v1192_v1  ;;  %v1196_v5 = vshrl.u32 %v3098_v14, %v3132_v7  ;;  %v1080_v22 = vadd.s32 %v1078_v17, %v1076_v28  ;;  %v1183_v58 = vshll.u32 %v3100_v37, %v3133_v63 }
  0xed   :  { %v1186_v55 = vshll.u32 %v3102_v31, %v3133_v63  ;;  %v1189_v57 = vshll.u32 %v3097_v48, %v3133_v63  ;;  %v962_v54 = vsub.s32 0, %v2204_v51  ;;  %v1070_v19 = vshrl.u32 %v2132_v10, 16 }
  0xee   :  { %v1092_v4 = vshrl.u32 %v2125_v16, 16  ;;  %v1195_v27 = vshll.u32 %v3106_v6, %v3133_v63  ;;  %v2249_v1 = vor.u32 %v1184_v33, %v1183_v58  ;;  %vm1201_vm1 = vcmp.lt.s32.totalorder %v3134_v53, 4 }
  0xef   :  { %v2251_v28 = vor.u32 %v1187_v62, %v1186_v55  ;;  %v2253_v17 = vor.u32 %v1190_v39, %v1189_v57  ;;  %v1174_v36 = vor.u32 8388608, %v1173_v52  ;;  %v1207_v56 = vsel %vm1201_vm1, %v1194_v15, 920167782 }
  0xf0   :  { %v1103_v29 = vadd.s32 %v1102_v50, %v1092_v4  ;;  %v1197_v26 = vor.u32 %v1196_v5, %v1195_v27  ;;  %v814_v10 = vsub.s32 32, %v2201_v47  ;;  %v1028_v16 = vshrl.u32 %v3100_v37, %v1715_v13 }
  0xf1   :  { %v1049_v55 = vsel %vm1047_vm8, %v1999_v41, 2102212464  ;;  %v1081_v58 = vadd.s32 %v1080_v22, %v1070_v19  ;;  %v819_v57 = vadd.s32 127, %v818_v25  ;;  %v1094_v63 = vshrl.u32 %v2165_v11, 16 }
  0xf2   :  { %vm1198_vm9 = vcmp.lt.s32.totalorder %v3134_v53, 1  ;;  %vm1200_vm5 = vcmp.lt.s32.totalorder %v3134_v53, 3  ;;  %v963_v5 = vsel %vm961_vm0, %v962_v54, %v2204_v51  ;;  %v1072_v33 = vshrl.u32 %v2171_v3, 16 }
  0xf3   :  { %v1206_v13 = vsel %vm1198_vm9, %v2249_v1, %v2251_v28  ;;  %v1208_v41 = vsel %vm1200_vm5, %v2253_v17, %v1207_v56  ;;  %v1104_v22 = vadd.s32 %v1103_v29, %v1094_v63  ;;  %v1210_v25 = vsel %vm1198_vm9, %v2251_v28, %v2253_v17 }
  0xf4   :  { %v1211_v54 = vsel %vm1201_vm1, %v1197_v26, 1326507024  ;;  %v2284_v62 = vshll.u32 %v1174_v36, 8  ;;  %v2288_v3 = vshrl.u32 %v3098_v14, %v2180_v24  ;;  %v1048_v39 = vsel %vm1044_vm6, %v1028_v16, %v1995_v60 }
  0xf5   :  { %v2293_v56 = vadd.s32 %v1081_v58, %v1072_v33  ;;  %vm1199_vm8 = vcmp.lt.s32.totalorder %v3134_v53, 2  ;;  %v816_v29 = vshrl.u32 %v798_v9, %v814_v10  ;;  %v1050_v50 = vsel %vm1046_vm7, %v1997_v42, %v1049_v55 }
  0xf6   :  { %v1209_v36 = vsel %vm1199_vm8, %v1206_v13, %v1208_v41  ;;  %v1212_v26 = vsel %vm1200_vm5, %v1194_v15, %v1211_v54  ;;  %v820_v52 = vshll.u32 %v819_v57, 23  ;;  %v964_v19 = vclz %v963_v5 }
  0xf7   :  { %v3135_v4 = vshll.u32 %v2165_v11, 16  ;;  %v1213_v9 = vsel %vm1199_vm8, %v1210_v25, %v1212_v26  ;;  %v1108_v27 = vadd.s32 1, %v1104_v22  ;;  %v1215_v10 = vand.u32 65535, %v2284_v62 }
  0xf8   :  { %v1217_v42 = vand.u32 65535, %v1213_v9  ;;  %v1218_v16 = vshrl.u32 %v1213_v9, 16  ;;  %v1216_v15 = vshrl.u32 %v2284_v62, 16  ;;  %v1239_v55 = vand.u32 65535, %v1209_v36 }
  0xf9   :  { %v2306_v60 = vadd.s32 %v2175_v0, %v3135_v4  ;;  %v1240_v58 = vshrl.u32 %v1209_v36, 16  ;;  %v2316_v11 = vor.u32 %v2216_v23, %v2184_v20  ;;  %vm253_vm7 = vcmp.gt.s32.totalorder %v2211_v40, 0 }
  0xfa   :  { %v1051_v0 = vsel %vm1045_vm10, %v1048_v39, %v1050_v50  ;;  %v1220_v57 = vmul.u32 %v1218_v16, %v1215_v10  ;;  %v119_v63 = vor.u32 %v2288_v3, %v2189_v43  ;;  %v815_v5 = vshll.u32 %v2036_v46, %v2201_v47 }
  0xfb   :  { %vm1107_vm6 = vc.u32 %v2293_v56, %v2306_v60  ;;  %v1221_v33 = vmul.u32 %v1217_v42, %v1216_v15  ;;  %v1242_v13 = vmul.u32 %v1240_v58, %v1215_v10  ;;  %v821_v41 = vor.u32 4788187, %v820_v52 }
  0xfc   :  { %v1109_v25 = vsel %vm1107_vm6, %v1108_v27, %v1104_v22  ;;  %v1219_v54 = vmul.u32 %v1217_v42, %v1215_v10  ;;  %v1223_v36 = vshll.u32 %v1220_v57, 16  ;;  %v817_v20 = vor.u32 %v816_v29, %v815_v5 }
  0xfd   :  { %v1440_v23 = vadd.s32 4294967294, %v964_v19  ;;  %v1105_v26 = vmul.u32 %v2074_v38, %v1051_v0  ;;  %v1243_v4 = vmul.u32 %v1239_v55, %v1216_v15  ;;  %v1222_v8 = vmul.u32 %v1218_v16, %v1216_v15 }
  0xfe   :  { %v1225_v39 = vshll.u32 %v1221_v33, 16  ;;  %vm1227_vm10 = vc.u32 %v1219_v54, %v1223_v36  ;;  %v1229_v50 = vadd.s32 %v1223_v36, %v1219_v54  ;;  %vm123_vm12 = vcmp.lt.s32.totalorder %v2173_v2, 4  ;;  %v3136_v36 = vld [vmem:[#allocation11_spill] sm:$0xff] }
  0xff   :  { %v2327_v43 = vadd.s32 %v1109_v25, %v1105_v26  ;;  %v1228_v46 = vsel %vm1227_vm10, 1, %v3099_v61  ;;  %v1241_v47 = vmul.u32 %v1239_v55, %v1215_v10  ;;  %v1245_v3 = vshll.u32 %v1242_v13, 16 }
 0x100   :  { %v822_v22 = vand.u32 2147483647, %v821_v41  ;;  %v1230_v52 = vadd.s32 %v1228_v46, %v1222_v8  ;;  %vm1231_vm4 = vc.u32 %v1229_v50, %v1225_v39  ;;  %v1244_v29 = vmul.u32 %v1240_v58, %v1216_v15 }
 0x101   :  { %v1232_v19 = vsel %vm1231_vm4, 1, %v3099_v61  ;;  %v1247_v38 = vshll.u32 %v1243_v4, 16  ;;  %vm1249_vm2 = vc.u32 %v1241_v47, %v1245_v3  ;;  %v1251_v9 = vadd.s32 %v1245_v3, %v1241_v47 }
 0x102   :  { %vm1441_vm3 = vcmp.lt.s32.totalorder %v1440_v23, 0  ;;  %v1224_v27 = vshrl.u32 %v1220_v57, 16  ;;  %v1234_v42 = vadd.s32 %v1232_v19, %v1230_v52  ;;  %v1250_v16 = vsel %vm1249_vm2, 1, %v3099_v61 }
 0x103   :  { %v1111_v0 = vadd.s32 536870912, %v2327_v43  ;;  %v1182_v10 = vshrl.u32 %v3100_v37, %v3132_v7  ;;  %v1252_v55 = vadd.s32 %v1250_v16, %v1244_v29  ;;  %vm1253_vm13 = vc.u32 %v1251_v9, %v1247_v38 }
 0x104   :  { %v1203_v15 = vsel %vm1201_vm1, %v2253_v17, 2102212464  ;;  %v1226_v58 = vshrl.u32 %v1221_v33, 16  ;;  %v1235_v5 = vadd.s32 %v1234_v42, %v1224_v27  ;;  %v1254_v41 = vsel %vm1253_vm13, 1, %v3099_v61 }
 0x105   :  { %v254_v57 = vsel %vm253_vm7, %v2211_v40, 0  ;;  %v1246_v25 = vshrl.u32 %v1242_v13, 16  ;;  %v1256_v54 = vadd.s32 %v1254_v41, %v1252_v55  ;;  %v3080_v26 = vand.u32 2147483647, %v3136_v36 }
 0x106   :  { %v824_v8 = vcvt.s32.f32 %v817_v20  ;;  %v2344_v7 = vsel %vm1441_vm3, 0, %v1440_v23  ;;  %v1202_v17 = vsel %vm1198_vm9, %v1182_v10, %v2249_v1  ;;  %v2349_v33 = vadd.s32 %v1235_v5, %v1226_v58  ;;  %v3137_v1 = vld [vmem:[#allocation5_spill] sm:$0xff] }
 0x107   :  { %v1204_v39 = vsel %vm1200_vm5, %v2251_v28, %v1203_v15  ;;  %v1248_v50 = vshrl.u32 %v1243_v4, 16  ;;  %v1257_v40 = vadd.s32 %v1256_v54, %v1246_v25  ;;  %v95_v13 = vand.u32 8388607, %v3080_v26 }
 0x108   :  { %v133_v20 = vsel %vm123_vm12, %v119_v63, 1326507024  ;;  %v825_v23 = vmul.f32 %v824_v8, %v822_v22  ;;  %v2358_v46 = vshrl.u32 %v1111_v0, 30  ;;  %v2360_v47 = vadd.s32 %v1251_v9, %v1247_v38 }
 0x109   :  { %vm706_vm11 = vcmp.lt.s32.totalorder %v3137_v1, 0  ;;  %v972_v3 = vsub.s32 4294967266, %v2344_v7  ;;  %v1258_v52 = vadd.s32 %v1257_v40, %v1248_v50  ;;  %v108_v28 = vshll.u32 %v3102_v31, %v2163_v45 }
 0x10a   :  { %v109_v4 = vshrl.u32 %v3097_v48, %v2180_v24  ;;  %v1205_v29 = vsel %vm1199_vm8, %v1202_v17, %v1204_v39  ;;  %vm1261_vm14 = vc.u32 %v2349_v33, %v2360_v47  ;;  %v111_v63 = vshll.u32 %v3097_v48, %v2163_v45 }
 0x10b   :  { %v112_v22 = vshrl.u32 %v3104_v34, %v2180_v24  ;;  %v1262_v19 = vadd.s32 1, %v1258_v52  ;;  %v96_v38 = vor.u32 8388608, %v95_v13  ;;  %v106_v9 = vshrl.u32 %v3102_v31, %v2180_v24 }
 0x10c   :  { %v2378_v27 = vor.u32 %v109_v4, %v108_v28  ;;  %v2380_v42 = vand.u32 31, %v254_v57  ;;  %v3138_v53 = vand.u32 2147483647, %v3137_v1  ;;  %v826_v0 = vxor.u32 2147483648, %v825_v23 }
 0x10d   :  { %v1113_v10 = vshll.u32 %v2358_v46, 30  ;;  %v2389_v55 = vor.u32 %v112_v22, %v111_v63  ;;  %v973_v15 = vadd.s32 127, %v972_v3  ;;  %v1263_v58 = vsel %vm1261_vm14, %v1262_v19, %v1258_v52 }
 0x10e   :  { %vm2384_vm15 = vcmp.le.f32.partialorder %v3138_v53, 0.7853982  ;;  %v105_v5 = vshll.u32 %v3100_v37, %v2163_v45  ;;  %vm122_vm0 = vcmp.lt.s32.totalorder %v2173_v2, 3  ;;  %v968_v41 = vsub.s32 32, %v2344_v7 }
 0x10f   :  { %v1259_v25 = vmul.u32 %v2284_v62, %v1205_v29  ;;  %vm120_vm1 = vcmp.lt.s32.totalorder %v2173_v2, 1  ;;  %v134_v54 = vsel %vm122_vm0, %v2316_v11, %v133_v20  ;;  %v129_v8 = vsel %vm123_vm12, %v2316_v11, 920167782 }
 0x110   :  { %v2403_v17 = vor.u32 %v106_v9, %v105_v5  ;;  %v132_v45 = vsel %vm120_vm1, %v2378_v27, %v2389_v55  ;;  %v2409_v39 = vshll.u32 %v96_v38, 8  ;;  %v952_v62 = vadd.s32 %v2024_v30, %v2005_v59 }
 0x111   :  { %v2414_v50 = vsub.s32 %v2327_v43, %v1113_v10  ;;  %v2416_v40 = vadd.s32 %v1263_v58, %v1259_v25  ;;  %vm121_vm9 = vcmp.lt.s32.totalorder %v2173_v2, 2  ;;  %v2419_v11 = vshrl.u32 %v254_v57, 5 }
 0x112   :  { %v2422_v13 = vsub.s32 32, %v2380_v42  ;;  %v974_v20 = vshll.u32 %v973_v15, 23  ;;  %v135_v3 = vsel %vm121_vm9, %v132_v45, %v134_v54  ;;  %v268_v52 = vshll.u32 %v3104_v34, %v2380_v42 }
 0x113   :  { %v827_v59 = vsel %vm706_vm11, %v826_v0, %v825_v23  ;;  %v970_v30 = vshrl.u32 %v952_v62, %v968_v41  ;;  %v139_v43 = vand.u32 65535, %v135_v3  ;;  %v128_v57 = vsel %vm120_vm1, %v2403_v17, %v2378_v27 }
 0x114   :  { %v130_v28 = vsel %vm122_vm0, %v2389_v55, %v129_v8  ;;  %v137_v4 = vand.u32 65535, %v2409_v39  ;;  %v140_v29 = vshrl.u32 %v135_v3, 16  ;;  %v969_v63 = vshll.u32 %v2204_v51, %v2344_v7 }
 0x115   :  { %v1116_v22 = vsub.s32 0, %v2414_v50  ;;  %v1265_v23 = vadd.s32 536870912, %v2416_v40  ;;  %v138_v19 = vshrl.u32 %v2409_v39, 16  ;;  %v2446_v38 = vsel %vm2384_vm15, %v3137_v1, %v827_v59 }
 0x116   :  { %v975_v9 = vor.u32 4788187, %v974_v20  ;;  %vm1115_vm5 = vcmp.lt.s32.totalorder %v2414_v50, 0  ;;  %v142_v53 = vmul.u32 %v140_v29, %v137_v4  ;;  %v269_v0 = vshrl.u32 %v3106_v6, %v2422_v13 }
 0x117   :  { %v271_v51 = vshll.u32 %v3106_v6, %v2380_v42  ;;  %v131_v7 = vsel %vm121_vm9, %v128_v57, %v130_v28  ;;  %v2455_v10 = vmul.u32 %v139_v43, %v138_v19  ;;  %v828_v15 = vsub.s32 4, %v1972_v21 }
 0x118   :  { %v971_v58 = vor.u32 %v970_v30, %v969_v63  ;;  %v141_v5 = vmul.u32 %v139_v43, %v137_v4  ;;  %v145_v41 = vshll.u32 %v142_v53, 16  ;;  %v272_v25 = vshrl.u32 %v3098_v14, %v2422_v13 }
 0x119   :  { %v2462_v54 = vmul.f32 %v2446_v38, %v2446_v38  ;;  %v1117_v8 = vsel %vm1115_vm5, %v1116_v22, %v2414_v50  ;;  %v2465_v6 = vshrl.u32 %v1265_v23, 30  ;;  %v976_v45 = vand.u32 2147483647, %v975_v9 }
 0x11a   :  { %vm149_vm8 = vc.u32 %v141_v5, %v145_v41  ;;  %v151_v62 = vadd.s32 %v145_v41, %v141_v5  ;;  %v162_v20 = vshrl.u32 %v131_v7, 16  ;;  %v144_v3 = vmul.u32 %v140_v29, %v138_v19  ;;  %v3141_v5 = vld [vmem:[#allocation6_spill] sm:$0xff] }
 0x11b   :  { %v147_v59 = vshll.u32 %v2455_v10, 16  ;;  %v150_v30 = vsel %vm149_vm8, 1, %v3099_v61  ;;  %v161_v43 = vand.u32 65535, %v131_v7  ;;  %v2469_v57 = vor.u32 %v269_v0, %v268_v52 }
 0x11c   :  { %v829_v14 = vsel %vm706_vm11, %v828_v15, %v1972_v21  ;;  %v978_v28 = vcvt.s32.f32 %v971_v58  ;;  %v1118_v63 = vclz %v1117_v8  ;;  %v273_v22 = vor.u32 %v272_v25, %v271_v51 }
 0x11d   :  { %v1267_v23 = vshll.u32 %v2465_v6, 30  ;;  %v152_v9 = vadd.s32 %v150_v30, %v144_v3  ;;  %vm153_vm6 = vc.u32 %v151_v62, %v147_v59  ;;  %vm860_vm7 = vcmp.lt.s32.totalorder %v3141_v5, 0 }
 0x11e   :  { %v840_v29 = vmul.f32 -0.00019511016, %v2462_v54  ;;  %v979_v41 = vmul.f32 %v978_v28, %v976_v45  ;;  %v154_v7 = vsel %vm153_vm6, 1, %v3099_v61  ;;  %v164_v52 = vmul.u32 %v162_v20, %v137_v4 }
 0x11f   :  { %v2480_v0 = vadd.s32 %v2209_v49, %v2168_v18  ;;  %vm277_vm10 = vcmp.lt.s32.totalorder %v2419_v11, 4  ;;  %v831_v21 = vsel %vm2384_vm15, 0, %v829_v14  ;;  %v165_v51 = vmul.u32 %v161_v43, %v138_v19 }
 0x120   :  { %v2488_v15 = vsel %vm277_vm10, %v2469_v57, 920167782  ;;  %v833_v58 = vmul.f32 -0.001358992, %v2462_v54  ;;  %v1443_v25 = vadd.s32 4294967294, %v1118_v63  ;;  %v167_v8 = vshll.u32 %v164_v52, 16 }
 0x121   :  { %v2493_v45 = vsel %vm277_vm10, %v273_v22, 1326507024  ;;  %v2496_v18 = vsub.s32 %v2416_v40, %v1267_v23  ;;  %v156_v49 = vadd.s32 %v154_v7, %v152_v9  ;;  %v163_v16 = vmul.u32 %v161_v43, %v137_v4 }
 0x122   :  { %v841_v62 = vadd.f32 0.008332121, %v840_v29  ;;  %v2498_v3 = vand.u32 3, %v831_v21  ;;  %v980_v59 = vxor.u32 2147483648, %v979_v41  ;;  %v146_v30 = vshrl.u32 %v142_v53, 16 }
 0x123   :  { %v166_v14 = vmul.u32 %v162_v20, %v138_v19  ;;  %v169_v28 = vshll.u32 %v165_v51, 16  ;;  %vm171_vm4 = vc.u32 %v163_v16, %v167_v8  ;;  %v173_v26 = vadd.s32 %v167_v8, %v163_v16 }
 0x124   :  { %v834_v63 = vadd.f32 0.041655596, %v833_v58  ;;  %v982_v1 = vsub.s32 4, %v2160_v12  ;;  %vm1444_vm2 = vcmp.lt.s32.totalorder %v1443_v25, 0  ;;  %v172_v22 = vsel %vm171_vm4, 1, %v3099_v61 }
 0x125   :  { %v3142_v40 = vand.u32 2147483647, %v3141_v5  ;;  %v1270_v4 = vsub.s32 0, %v2496_v18  ;;  %v157_v43 = vadd.s32 %v156_v49, %v146_v30  ;;  %v174_v53 = vadd.s32 %v172_v22, %v166_v14 }
 0x126   :  { %vm175_vm13 = vc.u32 %v173_v26, %v169_v28  ;;  %vm1269_vm11 = vcmp.lt.s32.totalorder %v2496_v18, 0  ;;  %v104_v19 = vshrl.u32 %v3100_v37, %v2180_v24  ;;  %v125_v20 = vsel %vm123_vm12, %v2389_v55, 2102212464 }
 0x127   :  { %vm2504_vm3 = vcmp.le.f32.partialorder %v3142_v40, 0.7853982  ;;  %v242_v9 = vand.u32 2147483647, %v3118_v35  ;;  %v842_v29 = vmul.f32 %v841_v62, %v2462_v54  ;;  %v981_v7 = vsel %vm860_vm7, %v980_v59, %v979_v41 }
 0x128   :  { %v148_v21 = vshrl.u32 %v2455_v10, 16  ;;  %v176_v58 = vsel %vm175_vm13, 1, %v3099_v61  ;;  %v2521_v8 = vsel %vm1444_vm2, 0, %v1443_v25  ;;  %v124_v24 = vsel %vm120_vm1, %v104_v19, %v2403_v17 }
 0x129   :  { %v168_v49 = vshrl.u32 %v164_v52, 16  ;;  %v178_v16 = vadd.s32 %v176_v58, %v174_v53  ;;  %v1271_v55 = vsel %vm1269_vm11, %v1270_v4, %v2496_v18  ;;  %v126_v62 = vsel %vm122_vm0, %v2378_v27, %v125_v20 }
 0x12a   :  { %v2530_v30 = vadd.s32 %v157_v43, %v148_v21  ;;  %v170_v41 = vshrl.u32 %v165_v51, 16  ;;  %v249_v25 = vand.u32 8388607, %v242_v9  ;;  %v262_v59 = vshll.u32 %v3102_v31, %v2380_v42 }
 0x12b   :  { %v179_v10 = vadd.s32 %v178_v16, %v168_v49  ;;  %v263_v17 = vshrl.u32 %v3097_v48, %v2422_v13  ;;  %v2538_v52 = vadd.s32 %v173_v26, %v169_v28  ;;  %v260_v14 = vshrl.u32 %v3102_v31, %v2422_v13 }
 0x12c   :  { %v265_v27 = vshll.u32 %v3097_v48, %v2380_v42  ;;  %v266_v51 = vshrl.u32 %v3104_v34, %v2422_v13  ;;  %v1272_v22 = vclz %v1271_v55  ;;  %v127_v40 = vsel %vm121_vm9, %v124_v24, %v126_v62 }
 0x12d   :  { %v180_v4 = vadd.s32 %v179_v10, %v170_v41  ;;  %v2548_v43 = vor.u32 %v263_v17, %v262_v59  ;;  %v983_v26 = vsel %vm860_vm7, %v982_v1, %v2160_v12  ;;  %vm183_vm12 = vc.u32 %v2530_v30, %v2538_v52 }
 0x12e   :  { %v259_v48 = vshll.u32 %v3100_v37, %v2380_v42  ;;  %v2557_v31 = vor.u32 %v266_v51, %v265_v27  ;;  %v2562_v34 = vsel %vm2504_vm3, %v3141_v5, %v981_v7  ;;  %v1126_v2 = vsub.s32 4294967266, %v2521_v8 }
 0x12f   :  { %v184_v28 = vadd.s32 1, %v180_v4  ;;  %v250_v53 = vor.u32 8388608, %v249_v25  ;;  %v835_v19 = vmul.f32 %v834_v63, %v2462_v54  ;;  %v181_v12 = vmul.u32 %v2409_v39, %v127_v40 }
 0x130   :  { %v2567_v1 = vor.u32 %v260_v14, %v259_v48  ;;  %vm274_vm14 = vcmp.lt.s32.totalorder %v2419_v11, 1  ;;  %v843_v42 = vadd.f32 -0.16666654, %v842_v29  ;;  %v1446_v20 = vadd.s32 4294967294, %v1272_v22 }
 0x131   :  { %v185_v21 = vsel %vm183_vm12, %v184_v28, %v180_v4  ;;  %v286_v7 = vsel %vm274_vm14, %v2548_v43, %v2557_v31  ;;  %v985_v58 = vsel %vm2504_vm3, 0, %v983_v26  ;;  %v2578_v63 = vmul.f32 %v2562_v34, %v2562_v34 }
 0x132   :  { %v186_v39 = vadd.s32 %v185_v21, %v181_v12  ;;  %vm276_vm15 = vcmp.lt.s32.totalorder %v2419_v11, 3  ;;  %v1127_v24 = vadd.s32 127, %v1126_v2  ;;  %vm275_vm0 = vcmp.lt.s32.totalorder %v2419_v11, 2 }
 0x133   :  { %v288_v29 = vsel %vm276_vm15, %v2469_v57, %v2493_v45  ;;  %v2586_v49 = vshll.u32 %v250_v53, 8  ;;  %v282_v23 = vsel %vm274_vm14, %v2567_v1, %v2548_v43  ;;  %v284_v55 = vsel %vm276_vm15, %v2557_v31, %v2488_v15 }
 0x134   :  { %v187_v16 = vadd.s32 536870912, %v186_v39  ;;  %v289_v62 = vsel %vm275_vm0, %v286_v7, %v288_v29  ;;  %v836_v41 = vadd.f32 -0.4999988, %v835_v19  ;;  %v844_v10 = vmul.f32 %v843_v42, %v2462_v54 }
 0x135   :  { %v1122_v57 = vsub.s32 32, %v2521_v8  ;;  %vm1447_vm1 = vcmp.lt.s32.totalorder %v1446_v20, 0  ;;  %v291_v25 = vand.u32 65535, %v2586_v49  ;;  %v293_v59 = vand.u32 65535, %v289_v62 }
 0x136   :  { %v2600_v45 = vshrl.u32 %v187_v16, 30  ;;  %v294_v17 = vshrl.u32 %v289_v62, 16  ;;  %v2603_v14 = vand.u32 3, %v985_v58  ;;  %v1106_v15 = vadd.s32 %v2306_v60, %v2293_v56 }
 0x137   :  { %v1128_v27 = vshll.u32 %v1127_v24, 23  ;;  %v285_v51 = vsel %vm275_vm0, %v282_v23, %v284_v55  ;;  %v994_v22 = vmul.f32 -0.00019511016, %v2578_v63  ;;  %v292_v4 = vshrl.u32 %v2586_v49, 16 }
 0x138   :  { %v189_v40 = vshll.u32 %v2600_v45, 30  ;;  %v296_v26 = vmul.u32 %v294_v17, %v291_v25  ;;  %v837_v48 = vmul.f32 %v836_v41, %v2462_v54  ;;  %v845_v2 = vadd.f32 1.0, %v844_v10 }
 0x139   :  { %v1124_v28 = vshrl.u32 %v1106_v15, %v1122_v57  ;;  %v2614_v53 = vsel %vm1447_vm1, 0, %v1446_v20  ;;  %v2618_v56 = vmul.u32 %v293_v59, %v292_v4  ;;  %v316_v12 = vshrl.u32 %v285_v51, 16 }
 0x13a   :  { %v2616_v19 = vsub.s32 %v186_v39, %v189_v40  ;;  %v299_v60 = vshll.u32 %v296_v26, 16  ;;  %v987_v42 = vmul.f32 -0.001358992, %v2578_v63  ;;  %v1123_v21 = vshll.u32 %v2414_v50, %v2521_v8 }
 0x13b   :  { %v1129_v7 = vor.u32 4788187, %v1128_v27  ;;  %v295_v58 = vmul.u32 %v293_v59, %v291_v25  ;;  %v995_v24 = vadd.f32 0.008332121, %v994_v22  ;;  %v315_v20 = vand.u32 65535, %v285_v51 }
 0x13c   :  { %vm191_vm9 = vcmp.lt.s32.totalorder %v2616_v19, 0  ;;  %v192_v54 = vsub.s32 0, %v2616_v19  ;;  %v1125_v29 = vor.u32 %v1124_v28, %v1123_v21  ;;  %v1280_v39 = vsub.s32 4294967266, %v2614_v53 }
 0x13d   :  { %vm303_vm5 = vc.u32 %v295_v58, %v299_v60  ;;  %v305_v16 = vadd.s32 %v299_v60, %v295_v58  ;;  %v298_v55 = vmul.u32 %v294_v17, %v292_v4  ;;  %v301_v62 = vshll.u32 %v2618_v56, 16 }
 0x13e   :  { %v193_v23 = vsel %vm191_vm9, %v192_v54, %v2616_v19  ;;  %v318_v41 = vmul.u32 %v316_v12, %v291_v25  ;;  %v988_v50 = vadd.f32 0.041655596, %v987_v42  ;;  %v1130_v8 = vand.u32 2147483647, %v1129_v7 }
 0x13f   :  { %v194_v10 = vclz %v193_v23  ;;  %v304_v57 = vsel %vm303_vm5, 1, %v3099_v61  ;;  %v996_v59 = vmul.f32 %v995_v24, %v2578_v63  ;;  %vm307_vm8 = vc.u32 %v305_v16, %v301_v62 }
 0x140   :  { %v306_v15 = vadd.s32 %v304_v57, %v298_v55  ;;  %v319_v27 = vmul.u32 %v315_v20, %v292_v4  ;;  %v1132_v51 = vcvt.s32.f32 %v1125_v29  ;;  %v1281_v22 = vadd.s32 127, %v1280_v39 }
 0x141   :  { %v1425_v40 = vadd.s32 4294967294, %v194_v10  ;;  %v308_v28 = vsel %vm307_vm8, 1, %v3099_v61  ;;  %v2631_v60 = vadd.f32 1.0, %v837_v48  ;;  %vm1014_vm6 = vcmp.lt.s32.totalorder %v1562_v44, 0 }
 0x142   :  { %v310_v17 = vadd.s32 %v308_v28, %v306_v15  ;;  %v317_v42 = vmul.u32 %v315_v20, %v291_v25  ;;  %v321_v21 = vshll.u32 %v318_v41, 16  ;;  %v2635_v7 = vmul.f32 %v845_v2, %v2446_v38  ;;  %v3146_v28 = vld [vmem:[#allocation26_spill] sm:$0xff] }
 0x143   :  { %v1133_v58 = vmul.f32 %v1132_v51, %v1130_v8  ;;  %v1276_v24 = vsub.s32 32, %v2614_v53  ;;  %v300_v54 = vshrl.u32 %v296_v26, 16  ;;  %vm1426_vm7 = vcmp.lt.s32.totalorder %v1425_v40, 0 }
 0x144   :  { %v323_v29 = vshll.u32 %v319_v27, 16  ;;  %vm325_vm4 = vc.u32 %v317_v42, %v321_v21  ;;  %v327_v39 = vadd.s32 %v321_v21, %v317_v42  ;;  %v2639_v16 = vmul.f32 %v988_v50, %v2578_v63 }
 0x145   :  { %v2641_v48 = vadd.f32 -0.16666654, %v996_v59  ;;  %v1282_v23 = vshll.u32 %v1281_v22, 23  ;;  %v320_v55 = vmul.u32 %v316_v12, %v292_v4  ;;  %v1260_v25 = vadd.s32 %v2360_v47, %v2349_v33 }
 0x146   :  { %v311_v38 = vadd.s32 %v310_v17, %v300_v54  ;;  %v326_v2 = vsel %vm325_vm4, 1, %v3099_v61  ;;  %vm329_vm2 = vc.u32 %v327_v39, %v323_v29  ;;  %v1134_v20 = vxor.u32 2147483648, %v1133_v58 }
 0x147   :  { %v2646_v26 = vsel %vm1426_vm7, 0, %v1425_v40  ;;  %v279_v62 = vsel %vm277_vm10, %v2557_v31, 2102212464  ;;  %v328_v50 = vadd.s32 %v326_v2, %v320_v55  ;;  %v1278_v8 = vshrl.u32 %v1260_v25, %v1276_v24 }
 0x148   :  { %v258_v10 = vshrl.u32 %v3100_v37, %v2422_v13  ;;  %v302_v4 = vshrl.u32 %v2618_v56, 16  ;;  %v330_v33 = vsel %vm329_vm2, 1, %v3099_v61  ;;  %v1277_v47 = vshll.u32 %v2496_v18, %v2614_v53 }
 0x149   :  { %v1283_v12 = vor.u32 4788187, %v1282_v23  ;;  %v322_v57 = vshrl.u32 %v318_v41, 16  ;;  %v332_v59 = vadd.s32 %v330_v33, %v328_v50  ;;  %v202_v15 = vsub.s32 4294967266, %v2646_v26  ;;  %v3152_v23 = vld [vmem:[#allocation27_spill] sm:$0xff] }
 0x14a   :  { %v278_v31 = vsel %vm274_vm14, %v258_v10, %v2567_v1  ;;  %v280_v37 = vsel %vm276_vm15, %v2548_v43, %v279_v62  ;;  %v2664_v13 = vadd.s32 %v311_v38, %v302_v4  ;;  %v1135_v56 = vsel %vm1014_vm6, %v1134_v20, %v1133_v58  ;;  %v3147_v1 = vld [vmem:[#allocation23_spill] sm:$0xff]  ;;  %v3153_v38 = vld [vmem:[#allocation9_spill] sm:$0xff]  ;;  %v3154_v20 = vld [vmem:[#allocation22_spill] sm:$0xff] }
 0x14b   :  { %v1136_v18 = vsub.s32 4, %v2358_v46  ;;  %v324_v53 = vshrl.u32 %v319_v27, 16  ;;  %v333_v41 = vadd.s32 %v332_v59, %v322_v57  ;;  %v1279_v51 = vor.u32 %v1278_v8, %v1277_v47  ;;  %v3155_v47 = vld [vmem:[#allocation24_spill] sm:$0xff]  ;;  %v3156_v57 = vld [vmem:[#allocation7_spill] sm:$0xff] }
 0x14c   :  { %v2669_v22 = vadd.s32 %v327_v39, %v323_v29  ;;  %v3145_v40 = vshll.u32 %v1921_v32, 16  ;;  %v475_v17 = vshll.u32 %v3147_v1, 16  ;;  %v3148_v43 = vand.u32 2147483647, %v1562_v44  ;;  %v3151_v29 = vld [vmem:[#allocation21_spill] sm:$0xff] }
 0x14d   :  { %v1284_v21 = vand.u32 2147483647, %v1283_v12  ;;  %v281_v27 = vsel %vm275_vm0, %v278_v31, %v280_v37  ;;  %v334_v58 = vadd.s32 %v333_v41, %v324_v53  ;;  %v203_v54 = vadd.s32 127, %v202_v15 }
 0x14e   :  { %vm461_vm10 = vc.u32 %v3146_v28, %v3145_v40  ;;  %vm2677_vm3 = vcmp.le.f32.partialorder %v3148_v43, 0.7853982  ;;  %vm337_vm13 = vc.u32 %v2664_v13, %v2669_v22  ;;  %v454_v39 = vshrl.u32 %v3151_v29, 16 }
 0x14f   :  { %v462_v24 = vsel %vm461_vm10, 1, %v3099_v61  ;;  %v338_v25 = vadd.s32 1, %v334_v58  ;;  %v477_v2 = vshll.u32 %v3153_v38, 16  ;;  %vm479_vm11 = vc.u32 %v3154_v20, %v475_v17 }
 0x150   :  { %v464_v55 = vadd.s32 %v462_v24, %v3152_v23  ;;  %v481_v62 = vadd.s32 %v475_v17, %v3154_v20  ;;  %vm853_vm12 = vcmp.eq.s32.totalorder %v2498_v3, 2  ;;  %v1286_v11 = vcvt.s32.f32 %v1279_v51 }
 0x151   :  { %v335_v50 = vmul.u32 %v2586_v49, %v281_v27  ;;  %v480_v10 = vsel %vm479_vm11, 1, %v3099_v61  ;;  %v198_v4 = vsub.s32 32, %v2646_v26  ;;  %v339_v33 = vsel %vm337_vm13, %v338_v25, %v334_v58 }
 0x152   :  { %v465_v8 = vadd.s32 %v464_v55, %v454_v39  ;;  %v482_v12 = vadd.s32 %v480_v10, %v3155_v47  ;;  %vm483_vm14 = vc.u32 %v481_v62, %v477_v2  ;;  %vm1168_vm15 = vcmp.lt.s32.totalorder %v3156_v57, 0  ;;  %v3162_v10 = vld [vmem:[#allocation31_spill] sm:$0xff] }
 0x153   :  { %v182_v59 = vadd.s32 %v2538_v52, %v2530_v30  ;;  %v340_v15 = vadd.s32 %v339_v33, %v335_v50  ;;  %v456_v31 = vshrl.u32 %v1921_v32, 16  ;;  %v484_v37 = vsel %vm483_vm14, 1, %v3099_v61  ;;  %v3164_v33 = vld [vmem:[#allocation20_spill] sm:$0xff] }
 0x154   :  { %v1287_v49 = vmul.f32 %v1286_v11, %v1284_v21  ;;  %v204_v53 = vshll.u32 %v203_v54, 23  ;;  %v476_v41 = vshrl.u32 %v3147_v1, 16  ;;  %v486_v51 = vadd.s32 %v484_v37, %v482_v12  ;;  %v3166_v12 = vld [vmem:[#allocation28_spill] sm:$0xff] }
 0x155   :  { %vm850_vm0 = vcmp.eq.s32.totalorder %v2498_v3, 0  ;;  %v854_v40 = vxor.u32 2147483648, %v2631_v60  ;;  %v990_v28 = vadd.f32 -0.4999988, %v2639_v16  ;;  %v341_v17 = vadd.s32 536870912, %v340_v15 }
 0x156   :  { %v2705_v43 = vadd.s32 %v465_v8, %v456_v31  ;;  %v998_v30 = vmul.f32 %v2641_v48, %v2578_v63  ;;  %v200_v32 = vshrl.u32 %v182_v59, %v198_v4  ;;  %v478_v52 = vshrl.u32 %v3153_v38, 16  ;;  %v3163_v4 = vld [vmem:[#allocation13_spill] sm:$0xff] }
 0x157   :  { %v487_v21 = vadd.s32 %v486_v51, %v476_v41  ;;  %v1137_v1 = vsel %vm1014_vm6, %v1136_v18, %v2358_v46  ;;  %v2716_v27 = vsel %vm2677_vm3, %v1562_v44, %v1135_v56  ;;  %v2718_v16 = vshrl.u32 %v341_v17, 30 }
 0x158   :  { %v2720_v58 = vadd.s32 %v481_v62, %v477_v2  ;;  %v1288_v24 = vxor.u32 2147483648, %v1287_v49  ;;  %v199_v48 = vshll.u32 %v2616_v19, %v2646_v26  ;;  %v205_v54 = vor.u32 4788187, %v204_v53 }
 0x159   :  { %v488_v29 = vadd.s32 %v487_v21, %v478_v52  ;;  %v851_v39 = vxor.u32 2147483648, %v2635_v7  ;;  %v3157_v23 = vand.u32 2147483647, %v3156_v57  ;;  %v343_v56 = vshll.u32 %v2718_v16, 30  ;;  %v3168_v21 = vld [vmem:[#allocation18_spill] sm:$0xff] }
 0x15a   :  { %vm491_vm9 = vc.u32 %v2705_v43, %v2720_v58  ;;  %v2737_v18 = vsel %vm853_vm12, %v854_v40, %v2635_v7  ;;  %v991_v19 = vmul.f32 %v990_v28, %v2578_v63  ;;  %v201_v26 = vor.u32 %v200_v32, %v199_v48  ;;  %v3160_v7 = vld [vmem:[#allocation30_spill] sm:$0xff]  ;;  %v3167_v32 = vld [vmem:[#allocation19_spill] sm:$0xff] }
 0x15b   :  { %vm2727_vm1 = vcmp.le.f32.partialorder %v3157_v23, 0.7853982  ;;  %v492_v55 = vadd.s32 1, %v488_v29  ;;  %v999_v25 = vadd.f32 1.0, %v998_v30  ;;  %v1139_v38 = vsel %vm2677_vm3, 0, %v1137_v1 }
 0x15c   :  { %v2744_v2 = vmul.f32 %v2716_v27, %v2716_v27  ;;  %v344_v20 = vsub.s32 %v340_v15, %v343_v56  ;;  %v1289_v62 = vsel %vm1168_vm15, %v1288_v24, %v1287_v49  ;;  %v206_v11 = vand.u32 2147483647, %v205_v54 }
 0x15d   :  { %v493_v50 = vsel %vm491_vm9, %v492_v55, %v488_v29  ;;  %v3161_v8 = vshll.u32 %v3160_v7, 16  ;;  %v3165_v42 = vmul.u32 %v3163_v4, %v3164_v33  ;;  %v629_v59 = vshll.u32 %v3166_v12, 16  ;;  %v3172_v55 = vld [vmem:[#allocation15_spill] sm:$0xff] }
 0x15e   :  { %vm345_vm8 = vcmp.lt.s32.totalorder %v344_v20, 0  ;;  %v346_v63 = vsub.s32 0, %v344_v20  ;;  %v2758_v15 = vsel %vm850_vm0, %v2631_v60, %v851_v39  ;;  %v2760_v31 = vadd.f32 1.0, %v991_v19 }
 0x15f   :  { %vm615_vm5 = vc.u32 %v3162_v10, %v3161_v8  ;;  %v494_v47 = vadd.s32 %v493_v50, %v3165_v42  ;;  %v2762_v37 = vand.u32 3, %v1139_v38  ;;  %v208_v49 = vcvt.s32.f32 %v201_v26 }
 0x160   :  { %v1148_v53 = vmul.f32 -0.00019511016, %v2744_v2  ;;  %v2768_v41 = vsel %vm2727_vm1, %v3156_v57, %v1289_v62  ;;  %v347_v51 = vsel %vm345_vm8, %v346_v63, %v344_v20  ;;  %v616_v40 = vsel %vm615_vm5, 1, %v3099_v61 }
 0x161   :  { %v2772_v28 = vmul.f32 %v999_v25, %v2562_v34  ;;  %v209_v60 = vmul.f32 %v208_v49, %v206_v11  ;;  %v348_v17 = vclz %v347_v51  ;;  %v495_v30 = vadd.s32 536870912, %v494_v47 }
 0x162   :  { %vm90_vm6 = vcmp.lt.s32.totalorder %v3136_v36, 0  ;;  %v631_v52 = vshll.u32 %v3167_v32, 16  ;;  %vm633_vm7 = vc.u32 %v3168_v21, %v629_v59  ;;  %v635_v1 = vadd.s32 %v629_v59, %v3168_v21 }
 0x163   :  { %v2780_v24 = vmul.f32 %v2768_v41, %v2768_v41  ;;  %v1428_v48 = vadd.s32 4294967294, %v348_v17  ;;  %v2782_v54 = vshrl.u32 %v495_v30, 30  ;;  %v618_v34 = vadd.s32 %v616_v40, %v2480_v0  ;;  %v3173_v0 = vld [vmem:[#allocation29_spill] sm:$0xff] }
 0x164   :  { %v1149_v29 = vadd.f32 0.008332121, %v1148_v53  ;;  %v3169_v39 = vand.u32 2147483647, %v3136_v36  ;;  %v634_v56 = vsel %vm633_vm7, 1, %v3099_v61  ;;  %vm637_vm2 = vc.u32 %v635_v1, %v631_v52 }
 0x165   :  { %v210_v19 = vxor.u32 2147483648, %v209_v60  ;;  %vm1429_vm10 = vcmp.lt.s32.totalorder %v1428_v48, 0  ;;  %v497_v26 = vshll.u32 %v2782_v54, 30  ;;  %v608_v25 = vshrl.u32 %v3172_v55, 16 }
 0x166   :  { %vm2787_vm4 = vcmp.le.f32.partialorder %v3169_v39, 0.7853982  ;;  %v1141_v38 = vmul.f32 -0.001358992, %v2744_v2  ;;  %v351_v62 = vsel %vm1429_vm10, 0, %v1428_v48  ;;  %v636_v11 = vadd.s32 %v634_v56, %v3173_v0 }
 0x167   :  { %v638_v50 = vsel %vm637_vm2, 1, %v3099_v61  ;;  %v1302_v8 = vmul.f32 -0.00019511016, %v2780_v24  ;;  %v336_v10 = vadd.s32 %v2669_v22, %v2664_v13  ;;  %v352_v63 = vsub.s32 32, %v351_v62 }
 0x168   :  { %v619_v4 = vadd.s32 %v618_v34, %v608_v25  ;;  %v1150_v33 = vmul.f32 %v1149_v29, %v2744_v2  ;;  %v356_v42 = vsub.s32 4294967266, %v351_v62  ;;  %v2801_v59 = vsub.s32 %v494_v47, %v497_v26 }
 0x169   :  { %v640_v49 = vadd.s32 %v638_v50, %v636_v11  ;;  %v211_v53 = vsel %vm90_vm6, %v210_v19, %v209_v60  ;;  %v354_v51 = vshrl.u32 %v336_v10, %v352_v63  ;;  %v610_v40 = vshrl.u32 %v3160_v7, 16 }
 0x16a   :  { %v630_v61 = vshrl.u32 %v3166_v12, 16  ;;  %v353_v17 = vshll.u32 %v344_v20, %v351_v62  ;;  %v357_v30 = vadd.s32 127, %v356_v42  ;;  %vm499_vm3 = vcmp.lt.s32.totalorder %v2801_v59, 0 }
 0x16b   :  { %v500_v13 = vsub.s32 0, %v2801_v59  ;;  %v1142_v22 = vadd.f32 0.041655596, %v1141_v38  ;;  %v1303_v21 = vadd.f32 0.008332121, %v1302_v8  ;;  %v2809_v48 = vadd.s32 %v619_v4, %v610_v40  ;;  %v3174_v40 = vld [vmem:[#allocation14_spill] sm:$0xff] }
 0x16c   :  { %v641_v47 = vadd.s32 %v640_v49, %v630_v61  ;;  %v355_v34 = vor.u32 %v354_v51, %v353_v17  ;;  %v358_v29 = vshll.u32 %v357_v30, 23  ;;  %v632_v39 = vshrl.u32 %v3167_v32, 16  ;;  %v3175_v61 = vld [vmem:[#allocation25_spill] sm:$0xff] }
 0x16d   :  { %v501_v60 = vsel %vm499_vm3, %v500_v13, %v2801_v59  ;;  %v1151_v7 = vadd.f32 -0.16666654, %v1150_v33  ;;  %v2816_v20 = vsel %vm2787_vm4, %v3136_v36, %v211_v53  ;;  %v2818_v56 = vadd.s32 %v635_v1, %v631_v52 }
 0x16e   :  { %v502_v12 = vclz %v501_v60  ;;  %v1008_v19 = vxor.u32 2147483648, %v2760_v31  ;;  %v1295_v26 = vmul.f32 -0.001358992, %v2780_v24  ;;  %v359_v55 = vor.u32 4788187, %v358_v29 }
 0x16f   :  { %v642_v25 = vadd.s32 %v641_v47, %v632_v39  ;;  %vm849_vm13 = vcmp.lt.s32.totalorder %v2498_v3, 2  ;;  %v1005_v38 = vxor.u32 2147483648, %v2772_v28  ;;  %v1304_v32 = vmul.f32 %v1303_v21, %v2780_v24 }
 0x170   :  { %v1431_v62 = vadd.s32 4294967294, %v502_v12  ;;  %vm645_vm11 = vc.u32 %v2809_v48, %v2818_v56  ;;  %v2829_v52 = vmul.f32 %v2816_v20, %v2816_v20  ;;  %v360_v1 = vand.u32 2147483647, %v359_v55 }
 0x171   :  { %v362_v0 = vcvt.s32.f32 %v355_v34  ;;  %v646_v11 = vadd.s32 1, %v642_v25  ;;  %vm1004_vm12 = vcmp.eq.s32.totalorder %v2603_v14, 0  ;;  %v1143_v50 = vmul.f32 %v1142_v22, %v2744_v2 }
 0x172   :  { %v1152_v8 = vmul.f32 %v1151_v7, %v2744_v2  ;;  %v1290_v10 = vsub.s32 4, %v2465_v6  ;;  %vm1432_vm14 = vcmp.lt.s32.totalorder %v1431_v62, 0  ;;  %v1296_v63 = vadd.f32 0.041655596, %v1295_v26 }
 0x173   :  { %v363_v4 = vmul.f32 %v362_v0, %v360_v1  ;;  %v505_v33 = vsel %vm1432_vm14, 0, %v1431_v62  ;;  %v647_v42 = vsel %vm645_vm11, %v646_v11, %v642_v25  ;;  %vm1007_vm0 = vcmp.eq.s32.totalorder %v2603_v14, 2 }
 0x174   :  { %v490_v49 = vadd.s32 %v2720_v58, %v2705_v43  ;;  %v506_v53 = vsub.s32 32, %v505_v33  ;;  %v510_v51 = vsub.s32 4294967266, %v505_v33  ;;  %v3176_v17 = vmul.u32 %v3174_v40, %v3175_v61 }
 0x175   :  { %v1305_v13 = vadd.f32 -0.16666654, %v1304_v32  ;;  %v224_v22 = vmul.f32 -0.00019511016, %v2829_v52  ;;  %vm244_vm9 = vcmp.lt.s32.totalorder %v3118_v35, 0  ;;  %v364_v21 = vxor.u32 2147483648, %v363_v4 }
 0x176   :  { %v648_v30 = vadd.s32 %v647_v42, %v3176_v17  ;;  %vm1003_vm5 = vcmp.lt.s32.totalorder %v2603_v14, 2  ;;  %v507_v47 = vshll.u32 %v2801_v59, %v505_v33  ;;  %v508_v34 = vshrl.u32 %v490_v49, %v506_v53  ;;  %v3177_v32 = vld [vmem:[#allocation8_spill] sm:$0xff] }
 0x177   :  { %v511_v29 = vadd.s32 127, %v510_v51  ;;  %v1144_v43 = vadd.f32 -0.4999988, %v1143_v50  ;;  %v1153_v58 = vadd.f32 1.0, %v1152_v8  ;;  %v1291_v39 = vsel %vm1168_vm15, %v1290_v10, %v2465_v6 }
 0x178   :  { %v649_v60 = vadd.s32 536870912, %v648_v30  ;;  %v365_v7 = vsel %vm244_vm9, %v364_v21, %v363_v4  ;;  %v1297_v12 = vmul.f32 %v1296_v63, %v2780_v24  ;;  %v509_v26 = vor.u32 %v508_v34, %v507_v47 }
 0x179   :  { %v512_v55 = vshll.u32 %v511_v29, 23  ;;  %vm398_vm8 = vcmp.lt.s32.totalorder %v3177_v32, 0  ;;  %v2858_v59 = vsel %vm849_vm13, %v2758_v15, %v2737_v18  ;;  %vm1001_vm7 = vweird.f32 %v3141_v5 }
 0x17a   :  { %v2851_v25 = vshrl.u32 %v649_v60, 30  ;;  %v217_v6 = vmul.f32 -0.001358992, %v2829_v52  ;;  %v225_v62 = vadd.f32 0.008332121, %v224_v22  ;;  %v1306_v0 = vmul.f32 %v1305_v13, %v2780_v24 }
 0x17b   :  { %vm2864_vm15 = vcmp.le.f32.partialorder %v242_v9, 0.7853982  ;;  %v513_v3 = vor.u32 4788187, %v512_v55  ;;  %v1006_v15 = vsel %vm1004_vm12, %v2760_v31, %v1005_v38  ;;  %v1145_v50 = vmul.f32 %v1144_v43, %v2744_v2 }
 0x17c   :  { %v2872_v11 = vsel %vm2864_vm15, %v3118_v35, %v365_v7  ;;  %v651_v18 = vshll.u32 %v2851_v25, 30  ;;  %v2880_v9 = vmul.f32 %v1153_v58, %v2716_v27  ;;  %v1293_v8 = vsel %vm2727_vm1, 0, %v1291_v39 }
 0x17d   :  { %v1298_v10 = vadd.f32 -0.4999988, %v1297_v12  ;;  %v514_v63 = vand.u32 2147483647, %v513_v3  ;;  %v516_v4 = vcvt.s32.f32 %v509_v26  ;;  %v1009_v42 = vsel %vm1007_vm0, %v1008_v19, %v2772_v28 }
 0x17e   :  { %v2884_v33 = vsub.s32 %v648_v30, %v651_v18  ;;  %v218_v38 = vadd.f32 0.041655596, %v217_v6  ;;  %v226_v2 = vmul.f32 %v225_v62, %v2829_v52  ;;  %v2894_v27 = vmul.f32 %v2872_v11, %v2872_v11 }
 0x17f   :  { %v1307_v46 = vadd.f32 1.0, %v1306_v0  ;;  %v517_v49 = vmul.f32 %v516_v4, %v514_v63  ;;  %v1010_v51 = vsel %vm1003_vm5, %v1006_v15, %v1009_v42  ;;  %v2900_v31 = vadd.f32 1.0, %v1145_v50 }
 0x180   :  { %vm653_vm1 = vcmp.lt.s32.totalorder %v2884_v33, 0  ;;  %v654_v53 = vsub.s32 0, %v2884_v33  ;;  %vm1158_vm2 = vcmp.eq.s32.totalorder %v2762_v37, 0  ;;  %v2903_v28 = vand.u32 3, %v1293_v8 }
 0x181   :  { %v1159_v19 = vxor.u32 2147483648, %v2880_v9  ;;  %v1299_v40 = vmul.f32 %v1298_v10, %v2780_v24  ;;  %v518_v61 = vxor.u32 2147483648, %v517_v49  ;;  %v219_v30 = vmul.f32 %v218_v38, %v2829_v52 }
 0x182   :  { %v655_v17 = vsel %vm653_vm1, %v654_v53, %v2884_v33  ;;  %v227_v13 = vadd.f32 -0.16666654, %v226_v2  ;;  %v378_v22 = vmul.f32 -0.00019511016, %v2894_v27  ;;  %v2912_v21 = vsel %vm1001_vm7, nan, %v1010_v51 }
 0x183   :  { %v656_v14 = vclz %v655_v17  ;;  %v1308_v47 = vmul.f32 %v1307_v46, %v2768_v41  ;;  %v3180_v34 = vand.u32 2147483647, %v3177_v32  ;;  %v519_v24 = vsel %vm398_vm8, %v518_v61, %v517_v49 }
 0x184   :  { %v1162_v60 = vxor.u32 2147483648, %v2900_v31  ;;  %vm1312_vm3 = vcmp.eq.s32.totalorder %v2903_v28, 0  ;;  %v1160_v41 = vsel %vm1158_vm2, %v2900_v31, %v1159_v19  ;;  %vm1161_vm13 = vcmp.eq.s32.totalorder %v2762_v37, 2 }
 0x185   :  { %vm2917_vm10 = vcmp.le.f32.partialorder %v3180_v34, 0.7853982  ;;  %v1434_v43 = vadd.s32 4294967294, %v656_v14  ;;  %v1300_v58 = vadd.f32 1.0, %v1299_v40  ;;  %vm1315_vm11 = vcmp.eq.s32.totalorder %v2903_v28, 2 }
 0x186   :  { %v2928_v5 = vsel %vm2917_vm10, %v3177_v32, %v519_v24  ;;  %v212_v39 = vsub.s32 4, %v2600_v45  ;;  %v220_v12 = vadd.f32 -0.4999988, %v219_v30  ;;  %v228_v26 = vmul.f32 %v227_v13, %v2829_v52 }
 0x187   :  { %v524_v7 = vmul.f32 %v2928_v5, %v2928_v5  ;;  %v379_v55 = vadd.f32 0.008332121, %v378_v22  ;;  %vm1435_vm12 = vcmp.lt.s32.totalorder %v1434_v43, 0  ;;  %vm1157_vm14 = vcmp.lt.s32.totalorder %v2762_v37, 2  ;;  %v3183_v22 = vld [vmem:[#allocation10_spill] sm:$0xff]  ;;  %v1333_v37 = vpop.permute.xlu2 %1332 }
 0x188   :  { %vm1311_vm0 = vcmp.lt.s32.totalorder %v2903_v28, 2  ;;  %v1313_v6 = vxor.u32 2147483648, %v1308_v47  ;;  %v659_v3 = vsel %vm1435_vm12, 0, %v1434_v43  ;;  %v371_v18 = vmul.f32 -0.001358992, %v2894_v27 }
 0x189   :  { %v525_v62 = vmul.f32 -0.001358992, %v524_v7  ;;  %v532_v0 = vmul.f32 -0.00019511016, %v524_v7  ;;  %v520_v15 = vsub.s32 4, %v2782_v54  ;;  %v644_v50 = vadd.s32 %v2818_v56, %v2809_v48 }
 0x18a   :  { %v660_v8 = vsub.s32 32, %v659_v3  ;;  %v213_v10 = vsel %vm90_vm6, %v212_v39, %v2600_v45  ;;  %v664_v42 = vsub.s32 4294967266, %v659_v3  ;;  %v1316_v38 = vxor.u32 2147483648, %v1300_v58 }
 0x18b   :  { %v526_v63 = vadd.f32 0.041655596, %v525_v62  ;;  %v533_v4 = vadd.f32 0.008332121, %v532_v0  ;;  %v229_v2 = vadd.f32 1.0, %v228_v26  ;;  %v380_v46 = vmul.f32 %v379_v55, %v2894_v27 }
 0x18c   :  { %v662_v49 = vshrl.u32 %v644_v50, %v660_v8  ;;  %vm1155_vm5 = vweird.f32 %v1562_v44  ;;  %v661_v31 = vshll.u32 %v2884_v33, %v659_v3  ;;  %v665_v48 = vadd.s32 127, %v664_v42  ;;  %v1338_v44 = vpop.permute.xlu0 %1337 }
 0x18d   :  { %v527_v53 = vmul.f32 %v526_v63, %v524_v7  ;;  %v534_v51 = vmul.f32 %v533_v4, %v524_v7  ;;  %v1314_v56 = vsel %vm1312_vm3, %v1300_v58, %v1313_v6  ;;  %v221_v45 = vmul.f32 %v220_v12, %v2829_v52 }
 0x18e   :  { %v372_v19 = vadd.f32 0.041655596, %v371_v18  ;;  %v521_v40 = vsel %vm398_vm8, %v520_v15, %v2782_v54  ;;  %v663_v30 = vor.u32 %v662_v49, %v661_v31  ;;  %v666_v13 = vshll.u32 %v665_v48, 23 }
 0x18f   :  { %v528_v61 = vadd.f32 -0.4999988, %v527_v53  ;;  %v535_v17 = vadd.f32 -0.16666654, %v534_v51  ;;  %vm552_vm6 = vcmp.lt.s32.totalorder %v3183_v22, 0  ;;  %v1163_v33 = vsel %vm1161_vm13, %v1162_v60, %v2880_v9 }
 0x190   :  { %v1317_v14 = vsel %vm1315_vm11, %v1316_v38, %v1308_v47  ;;  %v215_v52 = vsel %vm2787_vm4, 0, %v213_v10  ;;  %v230_v34 = vmul.f32 %v229_v2, %v2816_v20  ;;  %v381_v24 = vadd.f32 -0.16666654, %v380_v46 }
 0x191   :  { %v529_v54 = vmul.f32 %v528_v61, %v524_v7  ;;  %v536_v43 = vmul.f32 %v535_v17, %v524_v7  ;;  %v667_v58 = vor.u32 4788187, %v666_v13  ;;  %v1164_v39 = vsel %vm1157_vm14, %v1160_v41, %v1163_v33  ;;  %v3184_v41 = vld [vmem:[#allocation5_spill] sm:$0xff] }
 0x192   :  { %v1318_v12 = vsel %vm1311_vm0, %v1314_v56, %v1317_v14  ;;  %v222_v26 = vadd.f32 1.0, %v221_v45  ;;  %v523_v9 = vsel %vm2917_vm10, 0, %v521_v40  ;;  %v373_v47 = vmul.f32 %v372_v19, %v2894_v27 }
 0x193   :  { %v537_v23 = vadd.f32 1.0, %v536_v43  ;;  %v668_v60 = vand.u32 2147483647, %v667_v58  ;;  %v670_v55 = vcvt.s32.f32 %v663_v30  ;;  %vm1309_vm4 = vweird.f32 %v3156_v57 }
 0x194   :  { %v232_v20 = vand.u32 3, %v215_v52  ;;  %v235_v7 = vxor.u32 2147483648, %v230_v34  ;;  %v366_v6 = vsub.s32 4, %v2718_v16  ;;  %vm847_vm8 = vweird.f32 %v3184_v41 }
 0x195   :  { %v382_v28 = vmul.f32 %v381_v24, %v2894_v27  ;;  %v530_v62 = vadd.f32 1.0, %v529_v54  ;;  %v538_v29 = vmul.f32 %v537_v23, %v2928_v5  ;;  %v671_v0 = vmul.f32 %v670_v55, %v668_v60 }
 0x196   :  { %v1165_v3 = vsel %vm1155_vm5, nan, %v1164_v39  ;;  %v1319_v18 = vsel %vm1309_vm4, nan, %v1318_v12  ;;  %v1345_v15 = vmul.f32 %v1333_v37, %v2912_v21  ;;  %v540_v57 = vand.u32 3, %v523_v9  ;;  %v1328_v9 = vpop.permute.xlu2 %1327 }
 0x197   :  { %v238_v50 = vxor.u32 2147483648, %v222_v26  ;;  %v374_v8 = vadd.f32 -0.4999988, %v373_v47  ;;  %v543_v10 = vxor.u32 2147483648, %v538_v29  ;;  %v672_v63 = vxor.u32 2147483648, %v671_v0 }
 0x198   :  { %vm233_vm7 = vcmp.lt.s32.totalorder %v232_v20, 2  ;;  %vm234_vm1 = vcmp.eq.s32.totalorder %v232_v20, 0  ;;  %v367_v4 = vsel %vm244_vm9, %v366_v6, %v2718_v16  ;;  %v3185_v5 = vand.u32 2147483647, %v3183_v22 }
 0x199   :  { %v236_v38 = vsel %vm234_vm1, %v222_v26, %v235_v7  ;;  %v383_v21 = vadd.f32 1.0, %v382_v28  ;;  %v546_v2 = vxor.u32 2147483648, %v530_v62  ;;  %v673_v46 = vsel %vm552_vm6, %v672_v63, %v671_v0 }
 0x19a   :  { %vm2986_vm2 = vcmp.le.f32.partialorder %v3185_v5, 0.7853982  ;;  %v1347_v49 = vmul.f32 %v1338_v44, %v1319_v18  ;;  %vm237_vm10 = vcmp.eq.s32.totalorder %v232_v20, 2  ;;  %vm542_vm3 = vcmp.eq.s32.totalorder %v540_v57, 0 }
 0x19b   :  { %v676_v16 = vsel %vm2986_vm2, %v3183_v22, %v673_v46  ;;  %v239_v53 = vsel %vm237_vm10, %v238_v50, %v230_v34  ;;  %v375_v51 = vmul.f32 %v374_v8, %v2894_v27  ;;  %v544_v31 = vsel %vm542_vm3, %v530_v62, %v543_v10 }
 0x19c   :  { %v678_v48 = vmul.f32 %v676_v16, %v676_v16  ;;  %v240_v56 = vsel %vm233_vm7, %v236_v38, %v239_v53  ;;  %v369_v45 = vsel %vm2864_vm15, 0, %v367_v4  ;;  %vm541_vm9 = vcmp.lt.s32.totalorder %v540_v57, 2 }
 0x19d   :  { %vm545_vm13 = vcmp.eq.s32.totalorder %v540_v57, 2  ;;  %v384_v19 = vmul.f32 %v383_v21, %v2872_v11  ;;  %v857_v30 = vsel %vm847_vm8, nan, %v2858_v59  ;;  %v1369_v13 = vadd.f32 %v1347_v49, %v1345_v15 }
 0x19e   :  { %v547_v40 = vsel %vm545_vm13, %v546_v2, %v538_v29  ;;  %v679_v61 = vmul.f32 -0.001358992, %v678_v48  ;;  %v686_v17 = vmul.f32 -0.00019511016, %v678_v48  ;;  %v674_v33 = vsub.s32 4, %v2851_v25 }
 0x19f   :  { %v548_v27 = vsel %vm541_vm9, %v544_v31, %v547_v40  ;;  %vm231_vm11 = vweird.f32 %v3136_v36  ;;  %v376_v14 = vadd.f32 1.0, %v375_v51  ;;  %v1346_v34 = vmul.f32 %v1338_v44, %v1165_v3  ;;  %v1323_v36 = vpop.permute.xlu1 %1322 }
 0x1a0   :  { %v680_v1 = vadd.f32 0.041655596, %v679_v61  ;;  %v687_v52 = vadd.f32 0.008332121, %v686_v17  ;;  %v241_v24 = vsel %vm231_vm11, nan, %v240_v56  ;;  %v386_v54 = vand.u32 3, %v369_v45 }
 0x1a1   :  { %vm539_vm15 = vweird.f32 %v3177_v32  ;;  %v389_v11 = vxor.u32 2147483648, %v384_v19  ;;  %v1344_v12 = vmul.f32 %v1333_v37, %v857_v30  ;;  %v1370_v59 = vrot.slane %v1369_v13, 4 }
 0x1a2   :  { %v549_v43 = vsel %vm539_vm15, nan, %v548_v27  ;;  %v681_v58 = vmul.f32 %v680_v1, %v678_v48  ;;  %v688_v39 = vmul.f32 %v687_v52, %v678_v48  ;;  %v675_v26 = vsel %vm552_vm6, %v674_v33, %v2851_v25 }
 0x1a3   :  { %v392_v47 = vxor.u32 2147483648, %v376_v14  ;;  %v1362_v55 = vadd.f32 %v1346_v34, %v1344_v12  ;;  %vm388_vm12 = vcmp.eq.s32.totalorder %v386_v54, 0  ;;  %v1340_v20 = vmul.f32 %v1323_v36, %v241_v24 }
 0x1a4   :  { %v682_v23 = vadd.f32 -0.4999988, %v681_v58  ;;  %v689_v60 = vadd.f32 -0.16666654, %v688_v39  ;;  %v1342_v7 = vmul.f32 %v1328_v9, %v549_v43  ;;  %v390_v32 = vsel %vm388_vm12, %v376_v14, %v389_v11 }
 0x1a5   :  { %v677_v6 = vsel %vm2986_vm2, 0, %v675_v26  ;;  %v1371_v28 = vadd.f32 %v1370_v59, %v1369_v13  ;;  %vm391_vm14 = vcmp.eq.s32.totalorder %v386_v54, 2  ;;  %vm387_vm0 = vcmp.lt.s32.totalorder %v386_v54, 2 }
 0x1a6   :  { %v683_v41 = vmul.f32 %v682_v23, %v678_v48  ;;  %v690_v37 = vmul.f32 %v689_v60, %v678_v48  ;;  %v393_v62 = vsel %vm391_vm14, %v392_v47, %v384_v19  ;;  %v1363_v0 = vrot.slane %v1362_v55, 4 }
 0x1a7   :  { %v394_v3 = vsel %vm387_vm0, %v390_v32, %v393_v62  ;;  %v694_v18 = vand.u32 3, %v677_v6  ;;  %v1348_v15 = vadd.f32 %v1342_v7, %v1340_v20  ;;  %v1372_v8 = vrot.slane %v1371_v28, 2 }
 0x1a8   :  { %v684_v25 = vadd.f32 1.0, %v683_v41  ;;  %v691_v29 = vadd.f32 1.0, %v690_v37  ;;  %vm385_vm5 = vweird.f32 %v3118_v35  ;;  %v1364_v4 = vadd.f32 %v1363_v0, %v1362_v55 }
 0x1a9   :  { %v395_v10 = vsel %vm385_vm5, nan, %v394_v3  ;;  %vm696_vm6 = vcmp.eq.s32.totalorder %v694_v18, 0  ;;  %vm699_vm4 = vcmp.eq.s32.totalorder %v694_v18, 2  ;;  %v1349_v5 = vrot.slane %v1348_v15, 4 }
 0x1aa   :  { %v692_v57 = vmul.f32 %v691_v29, %v676_v16  ;;  %v700_v50 = vxor.u32 2147483648, %v684_v25  ;;  %vm695_vm8 = vcmp.lt.s32.totalorder %v694_v18, 2  ;;  %v1373_v38 = vadd.f32 %v1372_v8, %v1371_v28 }
 0x1ab   :  { %vm693_vm7 = vweird.f32 %v3183_v22  ;;  %v1341_v2 = vmul.f32 %v1323_v36, %v395_v10  ;;  %v1365_v49 = vrot.slane %v1364_v4, 2  ;;  %v1350_v53 = vadd.f32 %v1349_v5, %v1348_v15 }
 0x1ac   :  { %v697_v63 = vxor.u32 2147483648, %v692_v57  ;;  %v701_v44 = vsel %vm699_vm4, %v700_v50, %v692_v57  ;;  %v1374_v51 = vrot.slane %v1373_v38, 1  ;;  %vm1382_vm1 = vcmask 1041408  }
 0x1ad   :  { %v1366_v31 = vadd.f32 %v1365_v49, %v1364_v4  ;;  %v1351_v48 = vrot.slane %v1350_v53, 2  ;;  %vm1390_vm2 = vcmask 1041409   ;;  %vm1392_vm10 = vcmask 1043459  }
 0x1ae   :  { %v698_v42 = vsel %vm696_vm6, %v684_v25, %v697_v63  ;;  %v1375_v45 = vadd.f32 %v1374_v51, %v1373_v38  ;;  %vm1394_vm3 = vcmask 1045509   ;;  %vm1396_vm9 = vcmask 1047559  }
 0x1af   :  { %v702_v21 = vsel %vm695_vm8, %v698_v42, %v701_v44  ;;  %v1367_v40 = vrot.slane %v1366_v31, 1  ;;  %v1352_v61 = vadd.f32 %v1351_v48, %v1350_v53 }
 0x1b0   :  { %v703_v46 = vsel %vm693_vm7, nan, %v702_v21  ;;  %v1381_v30 = vrot.slane %v1375_v45, 6 }
 0x1b1   :  { %v1343_v16 = vmul.f32 %v1328_v9, %v703_v46  ;;  %v1368_v22 = vadd.f32 %v1367_v40, %v1366_v31  ;;  %v1353_v27 = vrot.slane %v1352_v61, 1 }
 0x1b3   :  { %v1355_v35 = vadd.f32 %v1343_v16, %v1341_v2  ;;  %v1384_v1 = vsel %vm1382_vm1, %v1368_v22, %v1381_v30  ;;  %v1354_v52 = vadd.f32 %v1353_v27, %v1352_v61 }
 0x1b4   :  { %v1389_v24 = vrot.slane %v1384_v1, 7 }
 0x1b5   :  { %v1356_v56 = vrot.slane %v1355_v35, 4 }
 0x1b7   :  { %v1357_v19 = vadd.f32 %v1356_v56, %v1355_v35 }
 0x1b9   :  { %v1358_v17 = vrot.slane %v1357_v19, 2 }
 0x1bb   :  { %v1359_v13 = vadd.f32 %v1358_v17, %v1357_v19 }
 0x1bd   :  { %v1360_v33 = vrot.slane %v1359_v13, 1 }
 0x1bf   :  { %v1361_v14 = vadd.f32 %v1360_v33, %v1359_v13 }
 0x1c1   :  { %v1380_v34 = vrot.slane %v1361_v14, 6 }
 0x1c3   :  { %v1383_v54 = vsel %vm1382_vm1, %v1354_v52, %v1380_v34 }
 0x1c4   :  { %v1391_v11 = vsel %vm1390_vm2, %v1389_v24, %v1383_v54 }
 0x1c5   :  { %v1393_v43 = vsel %vm1392_vm10, %v1389_v24, %v1391_v11 }
 0x1c6   :  { %v1395_v58 = vsel %vm1394_vm3, %v1389_v24, %v1393_v43 }
 0x1c7   :  { %v1397_v39 = vsel %vm1396_vm9, %v1389_v24, %v1395_v58 }
 0x1c8   :  { %1399 = vst [vmem:[#allocation2] sm:$0xf] %v1397_v39 }
 0x1c9   :  { %1410 = dma.vmem_to_hbm [thread:$0]  %s1406_s1, 64, %s1408_s9, [#allocation3]  }
 0x1ca   :  { %1483 = dma.done.wait [#allocation3], 64  }
 0x1cb   :  { %1484 = vsyncadd [#allocation3], 4294967232 }
 0x1cc   :  { %1415 = vsyncpa [#allocation3], 1 }

</bundles_post_ra>
